<compile_context>
chip_gen: v7x
topology: tpu7x:2x2x1
jax: 0.10.0
libtpu: 0.0.40
codegen_flags: <defaults>
</compile_context>

<pallas_src>
import functools

import numpy as np
import jax
import jax.numpy as jnp
from jax.experimental import pallas as pl
from jax.experimental.pallas import tpu as pltpu

_EPS = 1e-5                      # nn.BatchNorm2d default eps
_NEG_SLOPE = 0.01                # nn.LeakyReLU default negative_slope
_CPAD = 128                      # lane-dense channel / contraction padding


@functools.lru_cache(maxsize=None)
def _vmem_limit_bytes():
    """Generation-aware scoped-VMEM budget (~3/4 of physical; 48 MiB fallback fits v7x)."""
    try:
        cap = int(pltpu.get_tpu_info().vmem_capacity_bytes)
        return max(32 * 1024 * 1024, min(cap * 3 // 4, 100 * 1024 * 1024))
    except Exception:
        return 48 * 1024 * 1024


# ------------------------- Pallas kernels (hot path) -------------------------

def _matmul_stats_kernel(p_ref, w_ref, z_ref, sum_ref, ssq_ref):
    """Pass A: z = patches @ W (bf16 in, f32 accumulate), z stored bf16, per-channel
    sum / sum-of-squares accumulated directly into the resident per-core (1,1,C) outputs."""
    @pl.when(pl.program_id(1) == 0)
    def _():
        sum_ref[...] = jnp.zeros_like(sum_ref)
        ssq_ref[...] = jnp.zeros_like(ssq_ref)

    z = jnp.dot(p_ref[...], w_ref[...], preferred_element_type=jnp.float32)
    z_ref[...] = z.astype(z_ref.dtype)
    # TODO(synk): E[z^2] - E[z]^2 can cancel badly if |mean| >> std; switch to a shifted /
    # Welford accumulation if that regime ever shows up in real data.
    sum_ref[...] += jnp.sum(z, axis=0, keepdims=True)[None]
    ssq_ref[...] += jnp.sum(z * z, axis=0, keepdims=True)[None]


def _bn_lrelu_kernel(z_ref, scale_ref, shift_ref, o_ref):
    """Pass B (stage 1): folded BatchNorm affine + LeakyReLU; store only the real cout
    channels in bf16 (keeps the stage-2 im2col free of padded lanes)."""
    zn = z_ref[...].astype(jnp.float32) * scale_ref[...] + shift_ref[...]
    a = jnp.where(zn > 0, zn, _NEG_SLOPE * zn)
    cout = o_ref.shape[-1]
    o_ref[...] = a[:, :cout].astype(o_ref.dtype)


def _bn_lrelu_pool_kernel(z_ref, scale_ref, shift_ref, pool_ref, o_ref):
    """Pass B (stage 2): folded BN affine + LeakyReLU + fused 2x2 average pool.
    The pool is a tiny constant per-tile (tm//4, tm) bf16 matrix (MXU, f32 accumulate)."""
    zn = z_ref[...].astype(jnp.float32) * scale_ref[...] + shift_ref[...]
    a = jnp.where(zn > 0, zn, _NEG_SLOPE * zn)
    o_ref[...] = jnp.dot(pool_ref[...], a.astype(jnp.bfloat16),
                         preferred_element_type=jnp.float32)


# ------------------------- pallas_call wrappers -------------------------

def _matmul_stats(patches, wmat, tm, ncores):
    m, k = patches.shape
    c = wmat.shape[1]
    jpc = (m // tm) // ncores        # tiles per core
    return pl.pallas_call(
        _matmul_stats_kernel,
        out_shape=(jax.ShapeDtypeStruct((m, c), jnp.bfloat16),         # z (bf16 HBM round-trip)
                   jax.ShapeDtypeStruct((ncores, 1, c), jnp.float32),  # per-core partial sum
                   jax.ShapeDtypeStruct((ncores, 1, c), jnp.float32)), # per-core partial sumsq
        grid=(ncores, jpc),
        in_specs=[pl.BlockSpec((tm, k), lambda i, j: (i * jpc + j, 0)),
                  pl.BlockSpec((k, c), lambda i, j: (0, 0))],
        out_specs=(pl.BlockSpec((tm, c), lambda i, j: (i * jpc + j, 0)),
                   pl.BlockSpec((1, 1, c), lambda i, j: (i, 0, 0)),
                   pl.BlockSpec((1, 1, c), lambda i, j: (i, 0, 0))),
        compiler_params=pltpu.CompilerParams(
            dimension_semantics=("parallel", "arbitrary"),  # v7x: core-parallel partial stats
            vmem_limit_bytes=_vmem_limit_bytes()),
    )(patches, wmat)


def _bn_lrelu(z, scale, shift, tm, cout):
    m, c = z.shape
    return pl.pallas_call(
        _bn_lrelu_kernel,
        out_shape=jax.ShapeDtypeStruct((m, cout), jnp.bfloat16),
        grid=(m // tm,),
        in_specs=[pl.BlockSpec((tm, c), lambda i: (i, 0)),
                  pl.BlockSpec((1, c), lambda i: (0, 0)),
                  pl.BlockSpec((1, c), lambda i: (0, 0))],
        out_specs=pl.BlockSpec((tm, cout), lambda i: (i, 0)),
        compiler_params=pltpu.CompilerParams(
            dimension_semantics=("parallel",),    # independent tiles -> megacore on v7x
            vmem_limit_bytes=_vmem_limit_bytes()),
    )(z, scale, shift)


def _bn_lrelu_pool(z, scale, shift, pool_mat, tm):
    m, c = z.shape
    return pl.pallas_call(
        _bn_lrelu_pool_kernel,
        out_shape=jax.ShapeDtypeStruct((m // 4, c), jnp.float32),
        grid=(m // tm,),
        in_specs=[pl.BlockSpec((tm, c), lambda i: (i, 0)),
                  pl.BlockSpec((1, c), lambda i: (0, 0)),
                  pl.BlockSpec((1, c), lambda i: (0, 0)),
                  pl.BlockSpec((tm // 4, tm), lambda i: (0, 0))],
        out_specs=pl.BlockSpec((tm // 4, c), lambda i: (i, 0)),
        compiler_params=pltpu.CompilerParams(
            dimension_semantics=("parallel",),
            vmem_limit_bytes=_vmem_limit_bytes()),
    )(z, scale, shift, pool_mat)


# ------------------------------- JAX glue -------------------------------

def _im2col(x_nhwc, k):
    """VALID (pad=0) patch extraction; returns (N*Ho*Wo, k*k*C)."""
    n, h, w, c = x_nhwc.shape
    ho, wo = h - k + 1, w - k + 1
    cols = [x_nhwc[:, kh:kh + ho, kw:kw + wo, :] for kh in range(k) for kw in range(k)]
    patches = jnp.concatenate(cols, axis=-1)            # (N, Ho, Wo, k*k*C)
    return patches.reshape(n * ho * wo, k * k * c), (n, ho, wo)
    # TODO(synk): at large shapes, do the patch extraction inside pass A via halo row-block
    # reads / manual make_async_copy instead of materializing the k^2-expanded patches in HBM.


def _round_up(x, m):
    return -(-x // m) * m


def _pad_cols(a, target):
    pad = target - a.shape[-1]
    return a if pad == 0 else jnp.pad(a, [(0, 0)] * (a.ndim - 1) + [(0, pad)])


def _pad_rows(a, target):
    pad = target - a.shape[0]
    return a if pad == 0 else jnp.pad(a, [(0, pad)] + [(0, 0)] * (a.ndim - 1))


def _pad2(a, rows, cols):
    return jnp.pad(a, ((0, rows - a.shape[0]), (0, cols - a.shape[1])))


def _pick_tile(m, align, cap):
    """Row tile: a multiple of `align`; the largest one <= cap, or a single padded tile when m
    itself fits under the cap.  Caller pads M up to a multiple of the returned tile."""
    cap_t = max(align, (cap // align) * align)
    if m <= cap_t:
        return _round_up(m, align)
    return cap_t


def _grid_rows(m, tm):
    """Padded row count + number of core-partials.  Pads one extra zero tile only when that
    costs <~12.5% extra work, so 1-TC chips are never penalised much while v7x can split."""
    nt = -(-m // tm)
    if nt % 2 == 1 and nt >= 8:
        nt += 1
    ncores = 2 if (nt >= 2 and nt % 2 == 0) else 1
    return nt * tm, ncores


def _tile_pool_matrix(tm, w):
    """(tm//4, tm) constant bf16 matrix averaging 2x2/stride-2 windows of rows laid out
    (h, w)-row-major.  Valid when tm % (2*w) == 0 (tiles cover whole 2-row strips)."""
    wp = w // 2
    p = np.zeros((tm // 4, tm), np.float32)
    for s in range(tm // (2 * w)):
        for j in range(wp):
            r = s * wp + j
            for dh in range(2):
                for dw in range(2):
                    p[r, s * 2 * w + dh * w + 2 * j + dw] = 0.25
    return jnp.asarray(p, dtype=jnp.bfloat16)


def _scale_shift(s, q, m, gamma, beta):
    """Reduce per-core partial stats and fold training-mode BatchNorm (batch statistics) into
    per-channel y = z*scale + shift.  Divides by the TRUE row count (padded rows added 0)."""
    s = jnp.sum(s, axis=0)                 # (ncores, 1, C) -> (1, C)
    q = jnp.sum(q, axis=0)
    mean = s / float(m)
    var = jnp.maximum(q / float(m) - mean * mean, 0.0)
    scale = gamma * jax.lax.rsqrt(var + _EPS)
    return scale, beta - mean * scale


def init_params(key, in_channels, out_channels, k1=3, k2=3):
    ks = jax.random.split(key, 4)
    bound1 = 1.0 / np.sqrt(in_channels * k1 * k1)
    bound2 = 1.0 / np.sqrt(out_channels * k2 * k2)
    return dict(
        w1=jax.random.uniform(ks[0], (out_channels, in_channels, k1, k1), jnp.float32, -bound1, bound1),
        b1=jax.random.uniform(ks[1], (out_channels,), jnp.float32, -bound1, bound1),
        g1=jnp.ones((out_channels,), jnp.float32),
        be1=jnp.zeros((out_channels,), jnp.float32),
        w2=jax.random.uniform(ks[2], (out_channels, out_channels, k2, k2), jnp.float32, -bound2, bound2),
        b2=jax.random.uniform(ks[3], (out_channels,), jnp.float32, -bound2, bound2),
        g2=jnp.ones((out_channels,), jnp.float32),
        be2=jnp.zeros((out_channels,), jnp.float32),
    )
    # NOTE: b1/b2 exist for parity with nn.Conv2d but cancel exactly under training-mode BN,
    # so the kernels never load them (dead work removed from the hot path).


def conv_block_forward(params, x_nchw):
    cout = params["w1"].shape[0]
    cin = params["w1"].shape[1]
    k1, k2 = params["w1"].shape[2], params["w2"].shape[2]
    cpo = _round_up(cout, _CPAD)                          # lane-dense output-channel pad

    # NCHW -> NHWC; bf16 for MXU operands / HBM-resident activations (BN math stays f32).
    x = jnp.transpose(x_nchw, (0, 2, 3, 1)).astype(jnp.bfloat16)

    # ---------------- stage 1: Conv(k1) -> BN -> LeakyReLU ----------------
    p1, (n, h1, w1sp) = _im2col(x, k1)                    # (M1, k1*k1*Cin) bf16
    m1 = p1.shape[0]
    kd1 = _round_up(k1 * k1 * cin, _CPAD)
    tm1 = _pick_tile(m1, 16, 512)                         # big tiles amortize per-step overhead
    m1p, nc1 = _grid_rows(m1, tm1)
    p1 = _pad_rows(_pad_cols(p1, kd1), m1p)               # zero rows add 0 to sum/sumsq

    w1m = jnp.transpose(params["w1"], (2, 3, 1, 0)).reshape(k1 * k1 * cin, cout)
    w1m = _pad2(w1m, kd1, cpo).astype(jnp.bfloat16)
    g1 = _pad_cols(params["g1"].reshape(1, -1).astype(jnp.float32), cpo)
    be1 = _pad_cols(params["be1"].reshape(1, -1).astype(jnp.float32), cpo)

    z1, s1, q1 = _matmul_stats(p1, w1m, tm1, nc1)         # z1 bf16 (m1p, cpo)
    sc1, sh1 = _scale_shift(s1, q1, m1, g1, be1)
    y1 = _bn_lrelu(z1, sc1, sh1, tm1, cout)[:m1]          # (m1, cout) bf16 — no padded lanes
    y1 = y1.reshape(n, h1, w1sp, cout)

    # -------- stage 2: Conv(k2) -> BN -> LeakyReLU -> AvgPool2d(2,2) --------
    p2, (_, h2, w2sp) = _im2col(y1, k2)                   # (M2, k2*k2*cout) bf16 (72 lanes)
    m2 = p2.shape[0]
    assert h2 % 2 == 0 and w2sp % 2 == 0, "AvgPool2d(2,2) needs even H/W"
    kd2 = _round_up(k2 * k2 * cout, _CPAD)

    w2m = jnp.transpose(params["w2"], (2, 3, 1, 0)).reshape(k2 * k2 * cout, cout)
    w2m = _pad2(w2m, kd2, cpo).astype(jnp.bfloat16)
    g2 = _pad_cols(params["g2"].reshape(1, -1).astype(jnp.float32), cpo)
    be2 = _pad_cols(params["be2"].reshape(1, -1).astype(jnp.float32), cpo)

    # Tile must cover whole 2-row pooling strips, keep bf16 sublane tiling (x16) and give an
    # 8-aligned pooled block (x32); pad M2 with zero rows instead of asserting divisibility.
    align2 = int(np.lcm(2 * w2sp, 32))
    tm2 = _pick_tile(m2, align2, 1024)
    m2p, nc2 = _grid_rows(m2, tm2)
    p2 = _pad_rows(_pad_cols(p2, kd2), m2p)

    z2, s2, q2 = _matmul_stats(p2, w2m, tm2, nc2)
    sc2, sh2 = _scale_shift(s2, q2, m2, g2, be2)
    pool = _tile_pool_matrix(tm2, w2sp)                   # tiny per-tile constant (bf16)
    yp = _bn_lrelu_pool(z2, sc2, sh2, pool, tm2)          # (m2p//4, cpo) pooled rows, f32

    out = yp[:m2 // 4].reshape(n, h2 // 2, w2sp // 2, cpo)[..., :cout]
    return jnp.transpose(out, (0, 3, 1, 2))               # back to NCHW, f32

    # TODO(synk): BatchNorm running_mean/running_var momentum updates are training-side state,
    # not part of the returned forward value, and are not modeled here.


# ------------------------------- reference -------------------------------

def _reference(params, x_nchw):
    x = x_nchw.astype(jnp.float32)

    def conv(inp, w, b):
        return jax.lax.conv_general_dilated(
            inp, w, (1, 1), "VALID",
            dimension_numbers=("NCHW", "OIHW", "NCHW"),
            precision=jax.lax.Precision.HIGHEST) + b.reshape(1, -1, 1, 1)

    def bn(inp, g, be):
        mean = jnp.mean(inp, axis=(0, 2, 3), keepdims=True)
        var = jnp.mean((inp - mean) ** 2, axis=(0, 2, 3), keepdims=True)
        return (inp - mean) * jax.lax.rsqrt(var + _EPS) * g.reshape(1, -1, 1, 1) + be.reshape(1, -1, 1, 1)

    def lrelu(v):
        return jnp.where(v > 0, v, _NEG_SLOPE * v)

    y = lrelu(bn(conv(x, params["w1"], params["b1"]), params["g1"], params["be1"]))
    y = lrelu(bn(conv(y, params["w2"], params["b2"]), params["g2"], params["be2"]))
    nb, c, h, w = y.shape
    return y.reshape(nb, c, h // 2, 2, w // 2, 2).mean(axis=(3, 5))


# ------------------------------- main -------------------------------

if __name__ == "__main__":
    key = jax.random.PRNGKey(0)
    kx, kp = jax.random.split(key)
    x = jax.random.normal(kx, (2, 4, 16, 16), jnp.float32)        # NCHW, like PyTorch
    params = init_params(kp, in_channels=4, out_channels=8)

    out = jax.jit(conv_block_forward)(params, x)
    out = jax.block_until_ready(out)
    assert out.shape == (2, 8, 6, 6), out.shape

    ref = jax.block_until_ready(_reference(params, x))
    # bf16 MXU operands + bf16 z / y1 HBM intermediates -> loosened tolerance vs f32 reference.
    np.testing.assert_allclose(np.asarray(out), np.asarray(ref), rtol=3e-2, atol=3e-2)

    print("KERNEL_OK")
</pallas_src>

<mosaic_0001>
module attributes {stable_mosaic.version = 11 : i64} {
  func.func @_matmul_stats_kernel(%arg0: i32, %arg1: i32, %arg2: memref<400x128xbf16, #tpu.memory_space<vmem>>, %arg3: memref<128x128xbf16, #tpu.memory_space<vmem>>, %arg4: memref<400x128xbf16, #tpu.memory_space<vmem>>, %arg5: memref<1x1x128xf32, #tpu.memory_space<vmem>>, %arg6: memref<1x1x128xf32, #tpu.memory_space<vmem>>) attributes {dimension_semantics = [#tpu.dimension_semantics<parallel>, #tpu.dimension_semantics<arbitrary>], iteration_bounds = array<i64: 1, 1>, scalar_prefetch = 0 : i64, scratch_operands = 0 : i64, tpu.core_type = #tpu.core_type<tc>, window_params = [{transform_indices = @transform_0, window_bounds = array<i64: 400, 128>}, {pipeline_mode = #tpu.pipeline_mode<synchronous>, transform_indices = @transform_1, window_bounds = array<i64: 128, 128>}, {transform_indices = @transform_2, window_bounds = array<i64: 400, 128>}, {transform_indices = @transform_3, window_bounds = array<i64: 1, 1, 128>}, {transform_indices = @transform_4, window_bounds = array<i64: 1, 1, 128>}]} {
    %c0_i32 = arith.constant 0 : i32
    %0 = arith.cmpi eq, %arg1, %c0_i32 : i32
    %1 = arith.extui %0 : i1 to i32
    %c0_i32_0 = arith.constant 0 : i32
    %2 = arith.cmpi ne, %1, %c0_i32_0 : i32
    scf.if %2 {
      %cst_20 = arith.constant 0.000000e+00 : f32
      %21 = vector.broadcast %cst_20 : f32 to vector<1x1x128xf32>
      %c0_21 = arith.constant 0 : index
      %c0_22 = arith.constant 0 : index
      %c0_23 = arith.constant 0 : index
      %22 = vector.load %arg5[%c0_21, %c0_22, %c0_23] : memref<1x1x128xf32, #tpu.memory_space<vmem>>, vector<1x1x128xf32>
      tpu.vector_store %arg5[%c0_21, %c0_22, %c0_23], %21 {strides = array<i32>} : memref<1x1x128xf32, #tpu.memory_space<vmem>>, vector<1x1x128xf32>,
      %cst_24 = arith.constant 0.000000e+00 : f32
      %23 = vector.broadcast %cst_24 : f32 to vector<1x1x128xf32>
      %c0_25 = arith.constant 0 : index
      %c0_26 = arith.constant 0 : index
      %c0_27 = arith.constant 0 : index
      %24 = vector.load %arg6[%c0_25, %c0_26, %c0_27] : memref<1x1x128xf32, #tpu.memory_space<vmem>>, vector<1x1x128xf32>
      tpu.vector_store %arg6[%c0_25, %c0_26, %c0_27], %23 {strides = array<i32>} : memref<1x1x128xf32, #tpu.memory_space<vmem>>, vector<1x1x128xf32>,
    } else {
    }
    %c0 = arith.constant 0 : index
    %c0_1 = arith.constant 0 : index
    %3 = vector.load %arg2[%c0, %c0_1] : memref<400x128xbf16, #tpu.memory_space<vmem>>, vector<400x128xbf16>
    %c0_2 = arith.constant 0 : index
    %c0_3 = arith.constant 0 : index
    %4 = vector.load %arg3[%c0_2, %c0_3] : memref<128x128xbf16, #tpu.memory_space<vmem>>, vector<128x128xbf16>
    %cst = arith.constant dense<0.000000e+00> : vector<400x128xf32>
    %5 = tpu.matmul %3, %4, %cst {dimension_numbers = #tpu.dot_dimension_numbers<[1], [0], [0], [1], [0, 0, 1, 1], [], []>} : vector<400x128xbf16>, vector<128x128xbf16>, vector<400x128xf32> -> vector<400x128xf32>
    %6 = arith.truncf %5 : vector<400x128xf32> to vector<400x128xbf16>
    %c0_4 = arith.constant 0 : index
    %c0_5 = arith.constant 0 : index
    %7 = vector.load %arg4[%c0_4, %c0_5] : memref<400x128xbf16, #tpu.memory_space<vmem>>, vector<400x128xbf16>
    tpu.vector_store %arg4[%c0_4, %c0_5], %6 {strides = array<i32>} : memref<400x128xbf16, #tpu.memory_space<vmem>>, vector<400x128xbf16>,
    %c0_6 = arith.constant 0 : index
    %c0_7 = arith.constant 0 : index
    %c0_8 = arith.constant 0 : index
    %8 = vector.load %arg5[%c0_6, %c0_7, %c0_8] : memref<1x1x128xf32, #tpu.memory_space<vmem>>, vector<1x1x128xf32>
    %cst_9 = arith.constant dense<0.000000e+00> : vector<128xf32>
    %9 = vector.multi_reduction <add>, %5, %cst_9 [0] : vector<400x128xf32> to vector<128xf32>
    %10 = vector.shape_cast %9 : vector<128xf32> to vector<1x128xf32>
    %11 = vector.shape_cast %10 : vector<1x128xf32> to vector<1x1x128xf32>
    %12 = arith.addf %8, %11 : vector<1x1x128xf32>
    %c0_10 = arith.constant 0 : index
    %c0_11 = arith.constant 0 : index
    %c0_12 = arith.constant 0 : index
    %13 = vector.load %arg5[%c0_10, %c0_11, %c0_12] : memref<1x1x128xf32, #tpu.memory_space<vmem>>, vector<1x1x128xf32>
    tpu.vector_store %arg5[%c0_10, %c0_11, %c0_12], %12 {strides = array<i32>} : memref<1x1x128xf32, #tpu.memory_space<vmem>>, vector<1x1x128xf32>,
    %c0_13 = arith.constant 0 : index
    %c0_14 = arith.constant 0 : index
    %c0_15 = arith.constant 0 : index
    %14 = vector.load %arg6[%c0_13, %c0_14, %c0_15] : memref<1x1x128xf32, #tpu.memory_space<vmem>>, vector<1x1x128xf32>
    %15 = arith.mulf %5, %5 : vector<400x128xf32>
    %cst_16 = arith.constant dense<0.000000e+00> : vector<128xf32>
    %16 = vector.multi_reduction <add>, %15, %cst_16 [0] : vector<400x128xf32> to vector<128xf32>
    %17 = vector.shape_cast %16 : vector<128xf32> to vector<1x128xf32>
    %18 = vector.shape_cast %17 : vector<1x128xf32> to vector<1x1x128xf32>
    %19 = arith.addf %14, %18 : vector<1x1x128xf32>
    %c0_17 = arith.constant 0 : index
    %c0_18 = arith.constant 0 : index
    %c0_19 = arith.constant 0 : index
    %20 = vector.load %arg6[%c0_17, %c0_18, %c0_19] : memref<1x1x128xf32, #tpu.memory_space<vmem>>, vector<1x1x128xf32>
    tpu.vector_store %arg6[%c0_17, %c0_18, %c0_19], %19 {strides = array<i32>} : memref<1x1x128xf32, #tpu.memory_space<vmem>>, vector<1x1x128xf32>,
    return
  }
  func.func @transform_0(%arg0: i32, %arg1: i32) -> (i32, i32) {
    %c1_i32 = arith.constant 1 : i32
    %0 = arith.muli %arg0, %c1_i32 : i32
    %1 = arith.addi %0, %arg1 : i32
    %c0_i32 = arith.constant 0 : i32
    %c0_i32_0 = arith.constant 0 : i32
    return %1, %c0_i32 : i32, i32
  }
  func.func @transform_1(%arg0: i32, %arg1: i32) -> (i32, i32) {
    %c0_i32 = arith.constant 0 : i32
    %c0_i32_0 = arith.constant 0 : i32
    %c0_i32_1 = arith.constant 0 : i32
    return %c0_i32, %c0_i32_0 : i32, i32
  }
  func.func @transform_2(%arg0: i32, %arg1: i32) -> (i32, i32) {
    %c1_i32 = arith.constant 1 : i32
    %0 = arith.muli %arg0, %c1_i32 : i32
    %1 = arith.addi %0, %arg1 : i32
    %c0_i32 = arith.constant 0 : i32
    %c0_i32_0 = arith.constant 0 : i32
    return %1, %c0_i32 : i32, i32
  }
  func.func @transform_3(%arg0: i32, %arg1: i32) -> (i32, i32, i32) {
    %c0_i32 = arith.constant 0 : i32
    %c0_i32_0 = arith.constant 0 : i32
    %c0_i32_1 = arith.constant 0 : i32
    return %arg0, %c0_i32, %c0_i32_0 : i32, i32, i32
  }
  func.func @transform_4(%arg0: i32, %arg1: i32) -> (i32, i32, i32) {
    %c0_i32 = arith.constant 0 : i32
    %c0_i32_0 = arith.constant 0 : i32
    %c0_i32_1 = arith.constant 0 : i32
    return %arg0, %c0_i32, %c0_i32_0 : i32, i32, i32
  }
}

module attributes {stable_mosaic.version = 11 : i64} {
  func.func @_bn_lrelu_kernel(%arg0: i32, %arg1: memref<400x128xbf16, #tpu.memory_space<vmem>>, %arg2: memref<1x128xf32, #tpu.memory_space<vmem>>, %arg3: memref<1x128xf32, #tpu.memory_space<vmem>>, %arg4: memref<400x8xbf16, #tpu.memory_space<vmem>>) attributes {dimension_semantics = [#tpu.dimension_semantics<parallel>], iteration_bounds = array<i64: 1>, scalar_prefetch = 0 : i64, scratch_operands = 0 : i64, tpu.core_type = #tpu.core_type<tc>, window_params = [{transform_indices = @transform_0, window_bounds = array<i64: 400, 128>}, {pipeline_mode = #tpu.pipeline_mode<synchronous>, transform_indices = @transform_1, window_bounds = array<i64: 1, 128>}, {pipeline_mode = #tpu.pipeline_mode<synchronous>, transform_indices = @transform_2, window_bounds = array<i64: 1, 128>}, {transform_indices = @transform_3, window_bounds = array<i64: 400, 8>}]} {
    %c0 = arith.constant 0 : index
    %c0_0 = arith.constant 0 : index
    %0 = vector.load %arg1[%c0, %c0_0] : memref<400x128xbf16, #tpu.memory_space<vmem>>, vector<400x128xbf16>
    %1 = arith.extf %0 : vector<400x128xbf16> to vector<400x128xf32>
    %c0_1 = arith.constant 0 : index
    %c0_2 = arith.constant 0 : index
    %2 = vector.load %arg2[%c0_1, %c0_2] : memref<1x128xf32, #tpu.memory_space<vmem>>, vector<1x128xf32>
    %3 = vector.broadcast %2 : vector<1x128xf32> to vector<400x128xf32>
    %4 = arith.mulf %1, %3 : vector<400x128xf32>
    %c0_3 = arith.constant 0 : index
    %c0_4 = arith.constant 0 : index
    %5 = vector.load %arg3[%c0_3, %c0_4] : memref<1x128xf32, #tpu.memory_space<vmem>>, vector<1x128xf32>
    %6 = vector.broadcast %5 : vector<1x128xf32> to vector<400x128xf32>
    %7 = arith.addf %4, %6 : vector<400x128xf32>
    %cst = arith.constant 0.000000e+00 : f32
    %8 = vector.broadcast %cst : f32 to vector<400x128xf32>
    %9 = arith.cmpf ogt, %7, %8 : vector<400x128xf32>
    %cst_5 = arith.constant 0.00999999977 : f32
    %10 = vector.broadcast %cst_5 : f32 to vector<400x128xf32>
    %11 = arith.mulf %10, %7 : vector<400x128xf32>
    %12 = arith.select %9, %7, %11 : vector<400x128xi1>, vector<400x128xf32>
    %13 = vector.extract_strided_slice %12 {offsets = [0, 0], sizes = [400, 8], strides = [1, 1]} : vector<400x128xf32> to vector<400x8xf32>
    %14 = arith.truncf %13 : vector<400x8xf32> to vector<400x8xbf16>
    %c0_6 = arith.constant 0 : index
    %c0_7 = arith.constant 0 : index
    %15 = vector.load %arg4[%c0_6, %c0_7] : memref<400x8xbf16, #tpu.memory_space<vmem>>, vector<400x8xbf16>
    tpu.vector_store %arg4[%c0_6, %c0_7], %14 {strides = array<i32>} : memref<400x8xbf16, #tpu.memory_space<vmem>>, vector<400x8xbf16>,
    return
  }
  func.func @transform_0(%arg0: i32) -> (i32, i32) {
    %c0_i32 = arith.constant 0 : i32
    %c0_i32_0 = arith.constant 0 : i32
    return %arg0, %c0_i32 : i32, i32
  }
  func.func @transform_1(%arg0: i32) -> (i32, i32) {
    %c0_i32 = arith.constant 0 : i32
    %c0_i32_0 = arith.constant 0 : i32
    %c0_i32_1 = arith.constant 0 : i32
    return %c0_i32, %c0_i32_0 : i32, i32
  }
  func.func @transform_2(%arg0: i32) -> (i32, i32) {
    %c0_i32 = arith.constant 0 : i32
    %c0_i32_0 = arith.constant 0 : i32
    %c0_i32_1 = arith.constant 0 : i32
    return %c0_i32, %c0_i32_0 : i32, i32
  }
  func.func @transform_3(%arg0: i32) -> (i32, i32) {
    %c0_i32 = arith.constant 0 : i32
    %c0_i32_0 = arith.constant 0 : i32
    return %arg0, %c0_i32 : i32, i32
  }
}

module attributes {stable_mosaic.version = 11 : i64} {
  func.func @_bn_lrelu_pool_kernel(%arg0: i32, %arg1: memref<288x128xbf16, #tpu.memory_space<vmem>>, %arg2: memref<1x128xf32, #tpu.memory_space<vmem>>, %arg3: memref<1x128xf32, #tpu.memory_space<vmem>>, %arg4: memref<72x288xbf16, #tpu.memory_space<vmem>>, %arg5: memref<72x128xf32, #tpu.memory_space<vmem>>) attributes {dimension_semantics = [#tpu.dimension_semantics<parallel>], iteration_bounds = array<i64: 1>, scalar_prefetch = 0 : i64, scratch_operands = 0 : i64, tpu.core_type = #tpu.core_type<tc>, window_params = [{transform_indices = @transform_0, window_bounds = array<i64: 288, 128>}, {pipeline_mode = #tpu.pipeline_mode<synchronous>, transform_indices = @transform_1, window_bounds = array<i64: 1, 128>}, {pipeline_mode = #tpu.pipeline_mode<synchronous>, transform_indices = @transform_2, window_bounds = array<i64: 1, 128>}, {pipeline_mode = #tpu.pipeline_mode<synchronous>, transform_indices = @transform_3, window_bounds = array<i64: 72, 288>}, {transform_indices = @transform_4, window_bounds = array<i64: 72, 128>}]} {
    %c0 = arith.constant 0 : index
    %c0_0 = arith.constant 0 : index
    %0 = vector.load %arg1[%c0, %c0_0] : memref<288x128xbf16, #tpu.memory_space<vmem>>, vector<288x128xbf16>
    %1 = arith.extf %0 : vector<288x128xbf16> to vector<288x128xf32>
    %c0_1 = arith.constant 0 : index
    %c0_2 = arith.constant 0 : index
    %2 = vector.load %arg2[%c0_1, %c0_2] : memref<1x128xf32, #tpu.memory_space<vmem>>, vector<1x128xf32>
    %3 = vector.broadcast %2 : vector<1x128xf32> to vector<288x128xf32>
    %4 = arith.mulf %1, %3 : vector<288x128xf32>
    %c0_3 = arith.constant 0 : index
    %c0_4 = arith.constant 0 : index
    %5 = vector.load %arg3[%c0_3, %c0_4] : memref<1x128xf32, #tpu.memory_space<vmem>>, vector<1x128xf32>
    %6 = vector.broadcast %5 : vector<1x128xf32> to vector<288x128xf32>
    %7 = arith.addf %4, %6 : vector<288x128xf32>
    %cst = arith.constant 0.000000e+00 : f32
    %8 = vector.broadcast %cst : f32 to vector<288x128xf32>
    %9 = arith.cmpf ogt, %7, %8 : vector<288x128xf32>
    %cst_5 = arith.constant 0.00999999977 : f32
    %10 = vector.broadcast %cst_5 : f32 to vector<288x128xf32>
    %11 = arith.mulf %10, %7 : vector<288x128xf32>
    %12 = arith.select %9, %7, %11 : vector<288x128xi1>, vector<288x128xf32>
    %c0_6 = arith.constant 0 : index
    %c0_7 = arith.constant 0 : index
    %13 = vector.load %arg4[%c0_6, %c0_7] : memref<72x288xbf16, #tpu.memory_space<vmem>>, vector<72x288xbf16>
    %14 = arith.truncf %12 : vector<288x128xf32> to vector<288x128xbf16>
    %cst_8 = arith.constant dense<0.000000e+00> : vector<72x128xf32>
    %15 = tpu.matmul %13, %14, %cst_8 {dimension_numbers = #tpu.dot_dimension_numbers<[1], [0], [0], [1], [0, 0, 1, 1], [], []>} : vector<72x288xbf16>, vector<288x128xbf16>, vector<72x128xf32> -> vector<72x128xf32>
    %c0_9 = arith.constant 0 : index
    %c0_10 = arith.constant 0 : index
    %16 = vector.load %arg5[%c0_9, %c0_10] : memref<72x128xf32, #tpu.memory_space<vmem>>, vector<72x128xf32>
    tpu.vector_store %arg5[%c0_9, %c0_10], %15 {strides = array<i32>} : memref<72x128xf32, #tpu.memory_space<vmem>>, vector<72x128xf32>,
    return
  }
  func.func @transform_0(%arg0: i32) -> (i32, i32) {
    %c0_i32 = arith.constant 0 : i32
    %c0_i32_0 = arith.constant 0 : i32
    return %arg0, %c0_i32 : i32, i32
  }
  func.func @transform_1(%arg0: i32) -> (i32, i32) {
    %c0_i32 = arith.constant 0 : i32
    %c0_i32_0 = arith.constant 0 : i32
    %c0_i32_1 = arith.constant 0 : i32
    return %c0_i32, %c0_i32_0 : i32, i32
  }
  func.func @transform_2(%arg0: i32) -> (i32, i32) {
    %c0_i32 = arith.constant 0 : i32
    %c0_i32_0 = arith.constant 0 : i32
    %c0_i32_1 = arith.constant 0 : i32
    return %c0_i32, %c0_i32_0 : i32, i32
  }
  func.func @transform_3(%arg0: i32) -> (i32, i32) {
    %c0_i32 = arith.constant 0 : i32
    %c0_i32_0 = arith.constant 0 : i32
    %c0_i32_1 = arith.constant 0 : i32
    return %c0_i32, %c0_i32_0 : i32, i32
  }
  func.func @transform_4(%arg0: i32) -> (i32, i32) {
    %c0_i32 = arith.constant 0 : i32
    %c0_i32_0 = arith.constant 0 : i32
    return %arg0, %c0_i32 : i32, i32
  }
}

module attributes {stable_mosaic.version = 11 : i64} {
  func.func @_matmul_stats_kernel(%arg0: i32, %arg1: i32, %arg2: memref<288x128xbf16, #tpu.memory_space<vmem>>, %arg3: memref<128x128xbf16, #tpu.memory_space<vmem>>, %arg4: memref<288x128xbf16, #tpu.memory_space<vmem>>, %arg5: memref<1x1x128xf32, #tpu.memory_space<vmem>>, %arg6: memref<1x1x128xf32, #tpu.memory_space<vmem>>) attributes {dimension_semantics = [#tpu.dimension_semantics<parallel>, #tpu.dimension_semantics<arbitrary>], iteration_bounds = array<i64: 1, 1>, scalar_prefetch = 0 : i64, scratch_operands = 0 : i64, tpu.core_type = #tpu.core_type<tc>, window_params = [{transform_indices = @transform_0, window_bounds = array<i64: 288, 128>}, {pipeline_mode = #tpu.pipeline_mode<synchronous>, transform_indices = @transform_1, window_bounds = array<i64: 128, 128>}, {transform_indices = @transform_2, window_bounds = array<i64: 288, 128>}, {transform_indices = @transform_3, window_bounds = array<i64: 1, 1, 128>}, {transform_indices = @transform_4, window_bounds = array<i64: 1, 1, 128>}]} {
    %c0_i32 = arith.constant 0 : i32
    %0 = arith.cmpi eq, %arg1, %c0_i32 : i32
    %1 = arith.extui %0 : i1 to i32
    %c0_i32_0 = arith.constant 0 : i32
    %2 = arith.cmpi ne, %1, %c0_i32_0 : i32
    scf.if %2 {
      %cst_20 = arith.constant 0.000000e+00 : f32
      %21 = vector.broadcast %cst_20 : f32 to vector<1x1x128xf32>
      %c0_21 = arith.constant 0 : index
      %c0_22 = arith.constant 0 : index
      %c0_23 = arith.constant 0 : index
      %22 = vector.load %arg5[%c0_21, %c0_22, %c0_23] : memref<1x1x128xf32, #tpu.memory_space<vmem>>, vector<1x1x128xf32>
      tpu.vector_store %arg5[%c0_21, %c0_22, %c0_23], %21 {strides = array<i32>} : memref<1x1x128xf32, #tpu.memory_space<vmem>>, vector<1x1x128xf32>,
      %cst_24 = arith.constant 0.000000e+00 : f32
      %23 = vector.broadcast %cst_24 : f32 to vector<1x1x128xf32>
      %c0_25 = arith.constant 0 : index
      %c0_26 = arith.constant 0 : index
      %c0_27 = arith.constant 0 : index
      %24 = vector.load %arg6[%c0_25, %c0_26, %c0_27] : memref<1x1x128xf32, #tpu.memory_space<vmem>>, vector<1x1x128xf32>
      tpu.vector_store %arg6[%c0_25, %c0_26, %c0_27], %23 {strides = array<i32>} : memref<1x1x128xf32, #tpu.memory_space<vmem>>, vector<1x1x128xf32>,
    } else {
    }
    %c0 = arith.constant 0 : index
    %c0_1 = arith.constant 0 : index
    %3 = vector.load %arg2[%c0, %c0_1] : memref<288x128xbf16, #tpu.memory_space<vmem>>, vector<288x128xbf16>
    %c0_2 = arith.constant 0 : index
    %c0_3 = arith.constant 0 : index
    %4 = vector.load %arg3[%c0_2, %c0_3] : memref<128x128xbf16, #tpu.memory_space<vmem>>, vector<128x128xbf16>
    %cst = arith.constant dense<0.000000e+00> : vector<288x128xf32>
    %5 = tpu.matmul %3, %4, %cst {dimension_numbers = #tpu.dot_dimension_numbers<[1], [0], [0], [1], [0, 0, 1, 1], [], []>} : vector<288x128xbf16>, vector<128x128xbf16>, vector<288x128xf32> -> vector<288x128xf32>
    %6 = arith.truncf %5 : vector<288x128xf32> to vector<288x128xbf16>
    %c0_4 = arith.constant 0 : index
    %c0_5 = arith.constant 0 : index
    %7 = vector.load %arg4[%c0_4, %c0_5] : memref<288x128xbf16, #tpu.memory_space<vmem>>, vector<288x128xbf16>
    tpu.vector_store %arg4[%c0_4, %c0_5], %6 {strides = array<i32>} : memref<288x128xbf16, #tpu.memory_space<vmem>>, vector<288x128xbf16>,
    %c0_6 = arith.constant 0 : index
    %c0_7 = arith.constant 0 : index
    %c0_8 = arith.constant 0 : index
    %8 = vector.load %arg5[%c0_6, %c0_7, %c0_8] : memref<1x1x128xf32, #tpu.memory_space<vmem>>, vector<1x1x128xf32>
    %cst_9 = arith.constant dense<0.000000e+00> : vector<128xf32>
    %9 = vector.multi_reduction <add>, %5, %cst_9 [0] : vector<288x128xf32> to vector<128xf32>
    %10 = vector.shape_cast %9 : vector<128xf32> to vector<1x128xf32>
    %11 = vector.shape_cast %10 : vector<1x128xf32> to vector<1x1x128xf32>
    %12 = arith.addf %8, %11 : vector<1x1x128xf32>
    %c0_10 = arith.constant 0 : index
    %c0_11 = arith.constant 0 : index
    %c0_12 = arith.constant 0 : index
    %13 = vector.load %arg5[%c0_10, %c0_11, %c0_12] : memref<1x1x128xf32, #tpu.memory_space<vmem>>, vector<1x1x128xf32>
    tpu.vector_store %arg5[%c0_10, %c0_11, %c0_12], %12 {strides = array<i32>} : memref<1x1x128xf32, #tpu.memory_space<vmem>>, vector<1x1x128xf32>,
    %c0_13 = arith.constant 0 : index
    %c0_14 = arith.constant 0 : index
    %c0_15 = arith.constant 0 : index
    %14 = vector.load %arg6[%c0_13, %c0_14, %c0_15] : memref<1x1x128xf32, #tpu.memory_space<vmem>>, vector<1x1x128xf32>
    %15 = arith.mulf %5, %5 : vector<288x128xf32>
    %cst_16 = arith.constant dense<0.000000e+00> : vector<128xf32>
    %16 = vector.multi_reduction <add>, %15, %cst_16 [0] : vector<288x128xf32> to vector<128xf32>
    %17 = vector.shape_cast %16 : vector<128xf32> to vector<1x128xf32>
    %18 = vector.shape_cast %17 : vector<1x128xf32> to vector<1x1x128xf32>
    %19 = arith.addf %14, %18 : vector<1x1x128xf32>
    %c0_17 = arith.constant 0 : index
    %c0_18 = arith.constant 0 : index
    %c0_19 = arith.constant 0 : index
    %20 = vector.load %arg6[%c0_17, %c0_18, %c0_19] : memref<1x1x128xf32, #tpu.memory_space<vmem>>, vector<1x1x128xf32>
    tpu.vector_store %arg6[%c0_17, %c0_18, %c0_19], %19 {strides = array<i32>} : memref<1x1x128xf32, #tpu.memory_space<vmem>>, vector<1x1x128xf32>,
    return
  }
  func.func @transform_0(%arg0: i32, %arg1: i32) -> (i32, i32) {
    %c1_i32 = arith.constant 1 : i32
    %0 = arith.muli %arg0, %c1_i32 : i32
    %1 = arith.addi %0, %arg1 : i32
    %c0_i32 = arith.constant 0 : i32
    %c0_i32_0 = arith.constant 0 : i32
    return %1, %c0_i32 : i32, i32
  }
  func.func @transform_1(%arg0: i32, %arg1: i32) -> (i32, i32) {
    %c0_i32 = arith.constant 0 : i32
    %c0_i32_0 = arith.constant 0 : i32
    %c0_i32_1 = arith.constant 0 : i32
    return %c0_i32, %c0_i32_0 : i32, i32
  }
  func.func @transform_2(%arg0: i32, %arg1: i32) -> (i32, i32) {
    %c1_i32 = arith.constant 1 : i32
    %0 = arith.muli %arg0, %c1_i32 : i32
    %1 = arith.addi %0, %arg1 : i32
    %c0_i32 = arith.constant 0 : i32
    %c0_i32_0 = arith.constant 0 : i32
    return %1, %c0_i32 : i32, i32
  }
  func.func @transform_3(%arg0: i32, %arg1: i32) -> (i32, i32, i32) {
    %c0_i32 = arith.constant 0 : i32
    %c0_i32_0 = arith.constant 0 : i32
    %c0_i32_1 = arith.constant 0 : i32
    return %arg0, %c0_i32, %c0_i32_0 : i32, i32, i32
  }
  func.func @transform_4(%arg0: i32, %arg1: i32) -> (i32, i32, i32) {
    %c0_i32 = arith.constant 0 : i32
    %c0_i32_0 = arith.constant 0 : i32
    %c0_i32_1 = arith.constant 0 : i32
    return %arg0, %c0_i32, %c0_i32_0 : i32, i32, i32
  }
}

</mosaic_0001>

<bundles_post_ra>
// kernel: conv_block_forward.5
= control target key start
LH: loop header
LB: loop body
LE: loop exit
PB: predicated region body
PF: predicated region fallthrough
CT: control target
= control target key end

     0   :  { %vm578_vm0 = vcmask 60416   ;;  %s1268_s0 = inlined_call_operand.vmem [shape: bf16[400,128], index: 0, kind: input, shape index: {}]   ;;  %s1269_s1 = inlined_call_operand.vmem [shape: f32[1,128], index: 1, kind: input, shape index: {}]   ;;  %s1270_s2 = inlined_call_operand.vmem [shape: f32[1,128], index: 2, kind: input, shape index: {}]   ;;  %s1271_s3 = inlined_call_operand.vmem [shape: bf16[400,8], index: 3, kind: output, shape index: {}]  }
   0x1   :  { %v736_v0 = vld [vmem:[%s1268_s0] sm:$0xff]   ;;  %v835_v4 = vld [vmem:[%s1268_s0 + $0x8] sm:$0xff]   ;;  %v836_v5 = vld [vmem:[%s1268_s0 + $0x10] sm:$0xff]  }
   0x2   :  { %v885_v1 = vld [vmem:[%s1269_s1] ss:$0 sm:$0xff]  ;;  %v737_v2 = vunpack.c.l.bf16 %v736_v0  ;;  %v738_v3 = vunpack.c.h.bf16 %v736_v0  ;;  %v837_v6 = vld [vmem:[%s1268_s0 + $0x18] sm:$0xff]   ;;  %v741_v8 = vunpack.c.l.bf16 %v835_v4  ;;  %v742_v9 = vunpack.c.h.bf16 %v835_v4  ;;  %v839_v40 = vld [vmem:[%s1268_s0 + $0x28] sm:$0xff]  }
   0x3   :  { %v899_v7 = vld [vmem:[%s1270_s2] ss:$0 sm:$0xff]  ;;  %v745_v10 = vunpack.c.l.bf16 %v836_v5  ;;  %v746_v11 = vunpack.c.h.bf16 %v836_v5  ;;  %v749_v14 = vunpack.c.l.bf16 %v837_v6  ;;  %v750_v15 = vunpack.c.h.bf16 %v837_v6  ;;  %v840_v52 = vld [vmem:[%s1268_s0 + $0x30] sm:$0xff]  }
   0x4   :  { %v121_v12 = vmul.f32 %v737_v2, %v885_v1  ;;  %v122_v13 = vmul.f32 %v738_v3, %v885_v1  ;;  %v123_v16 = vmul.f32 %v741_v8, %v885_v1  ;;  %v124_v17 = vmul.f32 %v742_v9, %v885_v1  ;;  %v838_v39 = vld [vmem:[%s1268_s0 + $0x20] sm:$0xff]  }
   0x5   :  { %v125_v18 = vmul.f32 %v745_v10, %v885_v1  ;;  %v126_v19 = vmul.f32 %v746_v11, %v885_v1  ;;  %v127_v22 = vmul.f32 %v749_v14, %v885_v1  ;;  %v128_v23 = vmul.f32 %v750_v15, %v885_v1 }
   0x6   :  { %v178_v20 = vadd.f32 %v899_v7, %v121_v12  ;;  %v179_v21 = vadd.f32 %v899_v7, %v122_v13  ;;  %v180_v24 = vadd.f32 %v899_v7, %v123_v16  ;;  %v181_v25 = vadd.f32 %v899_v7, %v124_v17  ;;  %v841_v17 = vld [vmem:[%s1268_s0 + $0x38] sm:$0xff]  }
   0x7   :  { %v182_v26 = vadd.f32 %v899_v7, %v125_v18  ;;  %v183_v27 = vadd.f32 %v899_v7, %v126_v19  ;;  %v184_v46 = vadd.f32 %v899_v7, %v127_v22  ;;  %v185_v47 = vadd.f32 %v899_v7, %v128_v23  ;;  %v842_v18 = vld [vmem:[%s1268_s0 + $0x40] sm:$0xff]   ;;  %v843_v23 = vld [vmem:[%s1268_s0 + $0x48] sm:$0xff]  }
   0x8   :  { %vm228_vm1 = vcmp.gt.f32.partialorder %v178_v20, 0.0  ;;  %v278_v28 = vmul.f32 0.01, %v178_v20  ;;  %vm229_vm2 = vcmp.gt.f32.partialorder %v179_v21, 0.0  ;;  %v279_v29 = vmul.f32 0.01, %v179_v21 }
   0x9   :  { %vm230_vm3 = vcmp.gt.f32.partialorder %v180_v24, 0.0  ;;  %v280_v30 = vmul.f32 0.01, %v180_v24  ;;  %vm231_vm4 = vcmp.gt.f32.partialorder %v181_v25, 0.0  ;;  %v281_v31 = vmul.f32 0.01, %v181_v25 }
   0xa   :  { %v328_v32 = vsel %vm228_vm1, %v178_v20, %v278_v28  ;;  %v329_v33 = vsel %vm229_vm2, %v179_v21, %v279_v29  ;;  %vm232_vm5 = vcmp.gt.f32.partialorder %v182_v26, 0.0  ;;  %v282_v34 = vmul.f32 0.01, %v182_v26 }
   0xb   :  { %v685_v35 = vpack.c.bf16 %v328_v32, %v328_v32  ;;  %v686_v36 = vpack.c.bf16 %v329_v33, %v329_v33  ;;  %v330_v37 = vsel %vm230_vm3, %v180_v24, %v280_v30  ;;  %v331_v38 = vsel %vm231_vm4, %v181_v25, %v281_v31 }
   0xc   :  { %v687_v41 = vpack.c.bf16 %v330_v37, %v330_v37  ;;  %v688_v42 = vpack.c.bf16 %v331_v38, %v331_v38  ;;  %v332_v43 = vsel %vm232_vm5, %v182_v26, %v282_v34  ;;  %vm233_vm6 = vcmp.gt.f32.partialorder %v183_v27, 0.0 }
   0xd   :  { %579 = vst.msk [vmem:[%s1271_s3] sm:$0xf] %vm578_vm0, %v685_v35  ;;  %580 = vst.msk [vmem:[%s1271_s3 + $0x4] sm:$0xf] %vm578_vm0, %v686_v36  ;;  %v689_v44 = vpack.c.bf16 %v332_v43, %v332_v43  ;;  %v283_v45 = vmul.f32 0.01, %v183_v27  ;;  %v753_v48 = vunpack.c.l.bf16 %v838_v39  ;;  %v754_v49 = vunpack.c.h.bf16 %v838_v39 }
   0xe   :  { %581 = vst.msk [vmem:[%s1271_s3 + $0x8] sm:$0xf] %vm578_vm0, %v687_v41  ;;  %582 = vst.msk [vmem:[%s1271_s3 + $0xc] sm:$0xf] %vm578_vm0, %v688_v42  ;;  %v757_v50 = vunpack.c.l.bf16 %v839_v40  ;;  %v758_v51 = vunpack.c.h.bf16 %v839_v40  ;;  %vm234_vm7 = vcmp.gt.f32.partialorder %v184_v46, 0.0  ;;  %vm235_vm8 = vcmp.gt.f32.partialorder %v185_v47, 0.0 }
   0xf   :  { %583 = vst.msk [vmem:[%s1271_s3 + $0x10] sm:$0xf] %vm578_vm0, %v689_v44  ;;  %v333_v53 = vsel %vm233_vm6, %v183_v27, %v283_v45  ;;  %v284_v54 = vmul.f32 0.01, %v184_v46  ;;  %v285_v56 = vmul.f32 0.01, %v185_v47  ;;  %v129_v57 = vmul.f32 %v753_v48, %v885_v1 }
  0x10   :  { %v690_v55 = vpack.c.bf16 %v333_v53, %v333_v53  ;;  %v130_v58 = vmul.f32 %v754_v49, %v885_v1  ;;  %v131_v60 = vmul.f32 %v757_v50, %v885_v1  ;;  %v132_v61 = vmul.f32 %v758_v51, %v885_v1 }
  0x11   :  { %v334_v59 = vsel %vm234_vm7, %v184_v46, %v284_v54  ;;  %v761_v62 = vunpack.c.l.bf16 %v840_v52  ;;  %v335_v0 = vsel %vm235_vm8, %v185_v47, %v285_v56  ;;  %v186_v2 = vadd.f32 %v899_v7, %v129_v57  ;;  %v844_v57 = vld [vmem:[%s1268_s0 + $0x50] sm:$0xff]  }
  0x12   :  { %584 = vst.msk [vmem:[%s1271_s3 + $0x14] sm:$0xf] %vm578_vm0, %v690_v55  ;;  %v691_v63 = vpack.c.bf16 %v334_v59, %v334_v59  ;;  %v187_v3 = vadd.f32 %v899_v7, %v130_v58  ;;  %v692_v4 = vpack.c.bf16 %v335_v0, %v335_v0  ;;  %v188_v5 = vadd.f32 %v899_v7, %v131_v60 }
  0x13   :  { %v189_v6 = vadd.f32 %v899_v7, %v132_v61  ;;  %v133_v8 = vmul.f32 %v761_v62, %v885_v1  ;;  %vm236_vm9 = vcmp.gt.f32.partialorder %v186_v2, 0.0  ;;  %v286_v9 = vmul.f32 0.01, %v186_v2  ;;  %v845_v62 = vld [vmem:[%s1268_s0 + $0x58] sm:$0xff]  }
  0x14   :  { %585 = vst.msk [vmem:[%s1271_s3 + $0x18] sm:$0xf] %vm578_vm0, %v691_v63  ;;  %vm237_vm10 = vcmp.gt.f32.partialorder %v187_v3, 0.0  ;;  %v287_v10 = vmul.f32 0.01, %v187_v3  ;;  %vm238_vm11 = vcmp.gt.f32.partialorder %v188_v5, 0.0  ;;  %v762_v16 = vunpack.c.h.bf16 %v840_v52 }
  0x15   :  { %586 = vst.msk [vmem:[%s1271_s3 + $0x1c] sm:$0xf] %vm578_vm0, %v692_v4  ;;  %v288_v11 = vmul.f32 0.01, %v188_v5  ;;  %vm239_vm12 = vcmp.gt.f32.partialorder %v189_v6, 0.0  ;;  %v336_v13 = vsel %vm236_vm9, %v186_v2, %v286_v9  ;;  %v190_v15 = vadd.f32 %v899_v7, %v133_v8 }
  0x16   :  { %v289_v12 = vmul.f32 0.01, %v189_v6  ;;  %v337_v14 = vsel %vm237_vm10, %v187_v3, %v287_v10  ;;  %v693_v19 = vpack.c.bf16 %v336_v13, %v336_v13  ;;  %v134_v27 = vmul.f32 %v762_v16, %v885_v1  ;;  %v846_v3 = vld [vmem:[%s1268_s0 + $0x60] sm:$0xff]   ;;  %v847_v13 = vld [vmem:[%s1268_s0 + $0x68] sm:$0xff]  }
  0x17   :  { %v694_v20 = vpack.c.bf16 %v337_v14, %v337_v14  ;;  %v338_v21 = vsel %vm238_vm11, %v188_v5, %v288_v11  ;;  %vm240_vm13 = vcmp.gt.f32.partialorder %v190_v15, 0.0  ;;  %v290_v26 = vmul.f32 0.01, %v190_v15 }
  0x18   :  { %v339_v22 = vsel %vm239_vm12, %v189_v6, %v289_v12  ;;  %v695_v24 = vpack.c.bf16 %v338_v21, %v338_v21  ;;  %587 = vst.msk [vmem:[%s1271_s3 + $0x20] sm:$0xf] %vm578_vm0, %v693_v19  ;;  %v765_v28 = vunpack.c.l.bf16 %v841_v17  ;;  %v766_v29 = vunpack.c.h.bf16 %v841_v17 }
  0x19   :  { %v696_v25 = vpack.c.bf16 %v339_v22, %v339_v22  ;;  %588 = vst.msk [vmem:[%s1271_s3 + $0x24] sm:$0xf] %vm578_vm0, %v694_v20  ;;  %v769_v30 = vunpack.c.l.bf16 %v842_v18  ;;  %v340_v31 = vsel %vm240_vm13, %v190_v15, %v290_v26  ;;  %v770_v32 = vunpack.c.h.bf16 %v842_v18 }
  0x1a   :  { %589 = vst.msk [vmem:[%s1271_s3 + $0x28] sm:$0xf] %vm578_vm0, %v695_v24  ;;  %v773_v33 = vunpack.c.l.bf16 %v843_v23  ;;  %v774_v34 = vunpack.c.h.bf16 %v843_v23  ;;  %v697_v35 = vpack.c.bf16 %v340_v31, %v340_v31  ;;  %v191_v36 = vadd.f32 %v899_v7, %v134_v27 }
  0x1b   :  { %590 = vst.msk [vmem:[%s1271_s3 + $0x2c] sm:$0xf] %vm578_vm0, %v696_v25  ;;  %v135_v37 = vmul.f32 %v765_v28, %v885_v1  ;;  %v136_v38 = vmul.f32 %v766_v29, %v885_v1  ;;  %v137_v39 = vmul.f32 %v769_v30, %v885_v1  ;;  %v138_v40 = vmul.f32 %v770_v32, %v885_v1 }
  0x1c   :  { %v139_v41 = vmul.f32 %v773_v33, %v885_v1  ;;  %v140_v42 = vmul.f32 %v774_v34, %v885_v1  ;;  %591 = vst.msk [vmem:[%s1271_s3 + $0x30] sm:$0xf] %vm578_vm0, %v697_v35  ;;  %vm241_vm14 = vcmp.gt.f32.partialorder %v191_v36, 0.0  ;;  %v291_v43 = vmul.f32 0.01, %v191_v36 }
  0x1d   :  { %v192_v44 = vadd.f32 %v899_v7, %v135_v37  ;;  %v193_v45 = vadd.f32 %v899_v7, %v136_v38  ;;  %v194_v46 = vadd.f32 %v899_v7, %v137_v39  ;;  %v195_v47 = vadd.f32 %v899_v7, %v138_v40 }
  0x1e   :  { %v196_v48 = vadd.f32 %v899_v7, %v139_v41  ;;  %v197_v49 = vadd.f32 %v899_v7, %v140_v42  ;;  %v341_v50 = vsel %vm241_vm14, %v191_v36, %v291_v43  ;;  %v777_v8 = vunpack.c.l.bf16 %v844_v57  ;;  %v848_v41 = vld [vmem:[%s1268_s0 + $0x70] sm:$0xff]  }
  0x1f   :  { %vm242_vm15 = vcmp.gt.f32.partialorder %v192_v44, 0.0  ;;  %v292_v51 = vmul.f32 0.01, %v192_v44  ;;  %vm243_vm1 = vcmp.gt.f32.partialorder %v193_v45, 0.0  ;;  %v698_v52 = vpack.c.bf16 %v341_v50, %v341_v50 }
  0x20   :  { %v293_v53 = vmul.f32 0.01, %v193_v45  ;;  %vm244_vm2 = vcmp.gt.f32.partialorder %v194_v46, 0.0  ;;  %v294_v54 = vmul.f32 0.01, %v194_v46  ;;  %vm245_vm3 = vcmp.gt.f32.partialorder %v195_v47, 0.0 }
  0x21   :  { %v342_v55 = vsel %vm242_vm15, %v192_v44, %v292_v51  ;;  %v295_v56 = vmul.f32 0.01, %v195_v47  ;;  %vm246_vm4 = vcmp.gt.f32.partialorder %v196_v48, 0.0  ;;  %592 = vst.msk [vmem:[%s1271_s3 + $0x34] sm:$0xf] %vm578_vm0, %v698_v52  ;;  %vm247_vm5 = vcmp.gt.f32.partialorder %v197_v49, 0.0 }
  0x22   :  { %v699_v58 = vpack.c.bf16 %v342_v55, %v342_v55  ;;  %v343_v59 = vsel %vm243_vm1, %v193_v45, %v293_v53  ;;  %v344_v60 = vsel %vm244_vm2, %v194_v46, %v294_v54  ;;  %v296_v61 = vmul.f32 0.01, %v196_v48  ;;  %v849_v45 = vld [vmem:[%s1268_s0 + $0x78] sm:$0xff]  }
  0x23   :  { %v700_v63 = vpack.c.bf16 %v343_v59, %v343_v59  ;;  %v701_v0 = vpack.c.bf16 %v344_v60, %v344_v60  ;;  %v345_v2 = vsel %vm245_vm3, %v195_v47, %v295_v56  ;;  %v297_v6 = vmul.f32 0.01, %v197_v49 }
  0x24   :  { %593 = vst.msk [vmem:[%s1271_s3 + $0x38] sm:$0xf] %vm578_vm0, %v699_v58  ;;  %v702_v4 = vpack.c.bf16 %v345_v2, %v345_v2  ;;  %v346_v5 = vsel %vm246_vm4, %v196_v48, %v296_v61  ;;  %v778_v10 = vunpack.c.h.bf16 %v844_v57  ;;  %v781_v11 = vunpack.c.l.bf16 %v845_v62 }
  0x25   :  { %594 = vst.msk [vmem:[%s1271_s3 + $0x3c] sm:$0xf] %vm578_vm0, %v700_v63  ;;  %595 = vst.msk [vmem:[%s1271_s3 + $0x40] sm:$0xf] %vm578_vm0, %v701_v0  ;;  %v703_v9 = vpack.c.bf16 %v346_v5, %v346_v5  ;;  %v782_v12 = vunpack.c.h.bf16 %v845_v62  ;;  %v347_v14 = vsel %vm247_vm5, %v197_v49, %v297_v6  ;;  %v141_v15 = vmul.f32 %v777_v8, %v885_v1  ;;  %v850_v62 = vld [vmem:[%s1268_s0 + $0x80] sm:$0xff]  }
  0x26   :  { %596 = vst.msk [vmem:[%s1271_s3 + $0x44] sm:$0xf] %vm578_vm0, %v702_v4  ;;  %v785_v16 = vunpack.c.l.bf16 %v846_v3  ;;  %v786_v17 = vunpack.c.h.bf16 %v846_v3  ;;  %v704_v18 = vpack.c.bf16 %v347_v14, %v347_v14  ;;  %v142_v19 = vmul.f32 %v778_v10, %v885_v1 }
  0x27   :  { %597 = vst.msk [vmem:[%s1271_s3 + $0x48] sm:$0xf] %vm578_vm0, %v703_v9  ;;  %v143_v20 = vmul.f32 %v781_v11, %v885_v1  ;;  %v144_v21 = vmul.f32 %v782_v12, %v885_v1  ;;  %v198_v22 = vadd.f32 %v899_v7, %v141_v15  ;;  %v789_v25 = vunpack.c.l.bf16 %v847_v13 }
  0x28   :  { %v145_v23 = vmul.f32 %v785_v16, %v885_v1  ;;  %v146_v24 = vmul.f32 %v786_v17, %v885_v1  ;;  %598 = vst.msk [vmem:[%s1271_s3 + $0x4c] sm:$0xf] %vm578_vm0, %v704_v18  ;;  %v199_v26 = vadd.f32 %v899_v7, %v142_v19  ;;  %v790_v29 = vunpack.c.h.bf16 %v847_v13  ;;  %v851_v16 = vld [vmem:[%s1268_s0 + $0x88] sm:$0xff]  }
  0x29   :  { %v200_v27 = vadd.f32 %v899_v7, %v143_v20  ;;  %v201_v28 = vadd.f32 %v899_v7, %v144_v21  ;;  %vm248_vm6 = vcmp.gt.f32.partialorder %v198_v22, 0.0  ;;  %v298_v30 = vmul.f32 0.01, %v198_v22 }
  0x2a   :  { %v202_v31 = vadd.f32 %v899_v7, %v145_v23  ;;  %v203_v32 = vadd.f32 %v899_v7, %v146_v24  ;;  %vm249_vm7 = vcmp.gt.f32.partialorder %v199_v26, 0.0  ;;  %v299_v33 = vmul.f32 0.01, %v199_v26  ;;  %v852_v24 = vld [vmem:[%s1268_s0 + $0x90] sm:$0xff]  }
  0x2b   :  { %vm250_vm8 = vcmp.gt.f32.partialorder %v200_v27, 0.0  ;;  %v300_v34 = vmul.f32 0.01, %v200_v27  ;;  %v348_v35 = vsel %vm248_vm6, %v198_v22, %v298_v30  ;;  %vm251_vm9 = vcmp.gt.f32.partialorder %v201_v28, 0.0 }
  0x2c   :  { %v301_v36 = vmul.f32 0.01, %v201_v28  ;;  %vm252_vm10 = vcmp.gt.f32.partialorder %v202_v31, 0.0  ;;  %v705_v37 = vpack.c.bf16 %v348_v35, %v348_v35  ;;  %v349_v38 = vsel %vm249_vm7, %v199_v26, %v299_v33 }
  0x2d   :  { %v350_v39 = vsel %vm250_vm8, %v200_v27, %v300_v34  ;;  %v302_v40 = vmul.f32 0.01, %v202_v31  ;;  %v706_v42 = vpack.c.bf16 %v349_v38, %v349_v38  ;;  %vm253_vm11 = vcmp.gt.f32.partialorder %v203_v32, 0.0 }
  0x2e   :  { %v707_v43 = vpack.c.bf16 %v350_v39, %v350_v39  ;;  %v351_v44 = vsel %vm251_vm9, %v201_v28, %v301_v36  ;;  %599 = vst.msk [vmem:[%s1271_s3 + $0x50] sm:$0xf] %vm578_vm0, %v705_v37  ;;  %v303_v48 = vmul.f32 0.01, %v203_v32  ;;  %v147_v49 = vmul.f32 %v789_v25, %v885_v1 }
  0x2f   :  { %v708_v46 = vpack.c.bf16 %v351_v44, %v351_v44  ;;  %v352_v47 = vsel %vm252_vm10, %v202_v31, %v302_v40  ;;  %600 = vst.msk [vmem:[%s1271_s3 + $0x54] sm:$0xf] %vm578_vm0, %v706_v42  ;;  %v148_v51 = vmul.f32 %v790_v29, %v885_v1  ;;  %v793_v52 = vunpack.c.l.bf16 %v848_v41  ;;  %v1126_v29 = vld [vmem:[%s1268_s0 + $0x98] sm:$0xff]  }
  0x30   :  { %601 = vst.msk [vmem:[%s1271_s3 + $0x58] sm:$0xf] %vm578_vm0, %v707_v43  ;;  %v709_v50 = vpack.c.bf16 %v352_v47, %v352_v47  ;;  %v794_v53 = vunpack.c.h.bf16 %v848_v41  ;;  %v353_v54 = vsel %vm253_vm11, %v203_v32, %v303_v48  ;;  %v204_v55 = vadd.f32 %v899_v7, %v147_v49 }
  0x31   :  { %602 = vst.msk [vmem:[%s1271_s3 + $0x5c] sm:$0xf] %vm578_vm0, %v708_v46  ;;  %v797_v56 = vunpack.c.l.bf16 %v849_v45  ;;  %v798_v57 = vunpack.c.h.bf16 %v849_v45  ;;  %v710_v58 = vpack.c.bf16 %v353_v54, %v353_v54  ;;  %v205_v59 = vadd.f32 %v899_v7, %v148_v51 }
  0x32   :  { %603 = vst.msk [vmem:[%s1271_s3 + $0x60] sm:$0xf] %vm578_vm0, %v709_v50  ;;  %v149_v60 = vmul.f32 %v793_v52, %v885_v1  ;;  %v150_v61 = vmul.f32 %v794_v53, %v885_v1  ;;  %vm254_vm12 = vcmp.gt.f32.partialorder %v204_v55, 0.0  ;;  %v304_v63 = vmul.f32 0.01, %v204_v55 }
  0x33   :  { %v151_v0 = vmul.f32 %v797_v56, %v885_v1  ;;  %v152_v2 = vmul.f32 %v798_v57, %v885_v1  ;;  %604 = vst.msk [vmem:[%s1271_s3 + $0x64] sm:$0xf] %vm578_vm0, %v710_v58  ;;  %vm255_vm13 = vcmp.gt.f32.partialorder %v205_v59, 0.0  ;;  %v305_v3 = vmul.f32 0.01, %v205_v59  ;;  %v854_v58 = vld [vmem:[%s1268_s0 + $0xa0] sm:$0xff]  }
  0x34   :  { %v206_v4 = vadd.f32 %v899_v7, %v149_v60  ;;  %v207_v5 = vadd.f32 %v899_v7, %v150_v61  ;;  %v354_v6 = vsel %vm254_vm12, %v204_v55, %v304_v63  ;;  %v801_v10 = vunpack.c.l.bf16 %v850_v62 }
  0x35   :  { %v208_v8 = vadd.f32 %v899_v7, %v151_v0  ;;  %v209_v9 = vadd.f32 %v899_v7, %v152_v2  ;;  %v711_v11 = vpack.c.bf16 %v354_v6, %v354_v6  ;;  %v355_v12 = vsel %vm255_vm13, %v205_v59, %v305_v3  ;;  %v856_v6 = vld [vmem:[%s1268_s0 + $0xb0] sm:$0xff]  }
  0x36   :  { %vm256_vm14 = vcmp.gt.f32.partialorder %v206_v4, 0.0  ;;  %v306_v13 = vmul.f32 0.01, %v206_v4  ;;  %v712_v14 = vpack.c.bf16 %v355_v12, %v355_v12  ;;  %vm257_vm15 = vcmp.gt.f32.partialorder %v207_v5, 0.0  ;;  %v857_v12 = vld [vmem:[%s1268_s0 + $0xb8] sm:$0xff]  }
  0x37   :  { %v307_v15 = vmul.f32 0.01, %v207_v5  ;;  %vm258_vm1 = vcmp.gt.f32.partialorder %v208_v8, 0.0  ;;  %605 = vst.msk [vmem:[%s1271_s3 + $0x68] sm:$0xf] %vm578_vm0, %v711_v11  ;;  %vm259_vm2 = vcmp.gt.f32.partialorder %v209_v9, 0.0  ;;  %v153_v22 = vmul.f32 %v801_v10, %v885_v1 }
  0x38   :  { %v356_v17 = vsel %vm256_vm14, %v206_v4, %v306_v13  ;;  %v308_v18 = vmul.f32 0.01, %v208_v8  ;;  %v309_v19 = vmul.f32 0.01, %v209_v9  ;;  %606 = vst.msk [vmem:[%s1271_s3 + $0x6c] sm:$0xf] %vm578_vm0, %v712_v14  ;;  %v802_v23 = vunpack.c.h.bf16 %v850_v62 }
  0x39   :  { %v713_v20 = vpack.c.bf16 %v356_v17, %v356_v17  ;;  %v357_v21 = vsel %vm257_vm15, %v207_v5, %v307_v15  ;;  %v805_v28 = vunpack.c.l.bf16 %v851_v16  ;;  %v210_v32 = vadd.f32 %v899_v7, %v153_v22  ;;  %v855_v5 = vld [vmem:[%s1268_s0 + $0xa8] sm:$0xff]  }
  0x3a   :  { %v714_v25 = vpack.c.bf16 %v357_v21, %v357_v21  ;;  %v358_v26 = vsel %vm258_vm1, %v208_v8, %v308_v18  ;;  %v359_v27 = vsel %vm259_vm2, %v209_v9, %v309_v19  ;;  %v154_v33 = vmul.f32 %v802_v23, %v885_v1 }
  0x3b   :  { %607 = vst.msk [vmem:[%s1271_s3 + $0x70] sm:$0xf] %vm578_vm0, %v713_v20  ;;  %v715_v30 = vpack.c.bf16 %v358_v26, %v358_v26  ;;  %v716_v31 = vpack.c.bf16 %v359_v27, %v359_v27  ;;  %v155_v34 = vmul.f32 %v805_v28, %v885_v1  ;;  %v806_v35 = vunpack.c.h.bf16 %v851_v16 }
  0x3c   :  { %608 = vst.msk [vmem:[%s1271_s3 + $0x74] sm:$0xf] %vm578_vm0, %v714_v25  ;;  %v809_v36 = vunpack.c.l.bf16 %v852_v24  ;;  %v810_v37 = vunpack.c.h.bf16 %v852_v24  ;;  %vm260_vm3 = vcmp.gt.f32.partialorder %v210_v32, 0.0  ;;  %v310_v38 = vmul.f32 0.01, %v210_v32 }
  0x3d   :  { %609 = vst.msk [vmem:[%s1271_s3 + $0x78] sm:$0xf] %vm578_vm0, %v715_v30  ;;  %610 = vst.msk [vmem:[%s1271_s3 + $0x7c] sm:$0xf] %vm578_vm0, %v716_v31  ;;  %v211_v39 = vadd.f32 %v899_v7, %v154_v33  ;;  %v813_v40 = vunpack.c.l.bf16 %v1126_v29  ;;  %v212_v41 = vadd.f32 %v899_v7, %v155_v34  ;;  %v156_v42 = vmul.f32 %v806_v35, %v885_v1 }
  0x3e   :  { %v157_v43 = vmul.f32 %v809_v36, %v885_v1  ;;  %v158_v44 = vmul.f32 %v810_v37, %v885_v1  ;;  %v360_v45 = vsel %vm260_vm3, %v210_v32, %v310_v38  ;;  %v814_v3 = vunpack.c.h.bf16 %v1126_v29 }
  0x3f   :  { %vm261_vm4 = vcmp.gt.f32.partialorder %v211_v39, 0.0  ;;  %v311_v46 = vmul.f32 0.01, %v211_v39  ;;  %v159_v47 = vmul.f32 %v813_v40, %v885_v1  ;;  %v717_v48 = vpack.c.bf16 %v360_v45, %v360_v45 }
  0x40   :  { %vm262_vm5 = vcmp.gt.f32.partialorder %v212_v41, 0.0  ;;  %v312_v49 = vmul.f32 0.01, %v212_v41  ;;  %v213_v50 = vadd.f32 %v899_v7, %v156_v42  ;;  %v214_v52 = vadd.f32 %v899_v7, %v157_v43 }
  0x41   :  { %v361_v51 = vsel %vm261_vm4, %v211_v39, %v311_v46  ;;  %v215_v53 = vadd.f32 %v899_v7, %v158_v44  ;;  %v216_v54 = vadd.f32 %v899_v7, %v159_v47  ;;  %611 = vst.msk [vmem:[%s1271_s3 + $0x80] sm:$0xf] %vm578_vm0, %v717_v48  ;;  %v817_v4 = vunpack.c.l.bf16 %v854_v58 }
  0x42   :  { %v718_v55 = vpack.c.bf16 %v361_v51, %v361_v51  ;;  %v362_v56 = vsel %vm262_vm5, %v212_v41, %v312_v49  ;;  %vm263_vm6 = vcmp.gt.f32.partialorder %v213_v50, 0.0  ;;  %v313_v57 = vmul.f32 0.01, %v213_v50  ;;  %v858_v41 = vld [vmem:[%s1268_s0 + $0xc0] sm:$0xff]  }
  0x43   :  { %v719_v59 = vpack.c.bf16 %v362_v56, %v362_v56  ;;  %vm264_vm7 = vcmp.gt.f32.partialorder %v214_v52, 0.0  ;;  %v314_v60 = vmul.f32 0.01, %v214_v52  ;;  %vm265_vm8 = vcmp.gt.f32.partialorder %v215_v53, 0.0 }
  0x44   :  { %612 = vst.msk [vmem:[%s1271_s3 + $0x84] sm:$0xf] %vm578_vm0, %v718_v55  ;;  %v363_v61 = vsel %vm263_vm6, %v213_v50, %v313_v57  ;;  %v315_v62 = vmul.f32 0.01, %v215_v53  ;;  %vm266_vm9 = vcmp.gt.f32.partialorder %v216_v54, 0.0  ;;  %v818_v11 = vunpack.c.h.bf16 %v854_v58 }
  0x45   :  { %v316_v63 = vmul.f32 0.01, %v216_v54  ;;  %613 = vst.msk [vmem:[%s1271_s3 + $0x88] sm:$0xf] %vm578_vm0, %v719_v59  ;;  %v720_v0 = vpack.c.bf16 %v363_v61, %v363_v61  ;;  %v364_v2 = vsel %vm264_vm7, %v214_v52, %v314_v60  ;;  %v160_v15 = vmul.f32 %v814_v3, %v885_v1 }
  0x46   :  { %v721_v8 = vpack.c.bf16 %v364_v2, %v364_v2  ;;  %v365_v9 = vsel %vm265_vm8, %v215_v53, %v315_v62  ;;  %v161_v16 = vmul.f32 %v817_v4, %v885_v1  ;;  %v162_v17 = vmul.f32 %v818_v11, %v885_v1 }
  0x47   :  { %v366_v10 = vsel %vm266_vm9, %v216_v54, %v316_v63  ;;  %614 = vst.msk [vmem:[%s1271_s3 + $0x8c] sm:$0xf] %vm578_vm0, %v720_v0  ;;  %v722_v13 = vpack.c.bf16 %v365_v9, %v365_v9  ;;  %v821_v18 = vunpack.c.l.bf16 %v855_v5  ;;  %v822_v19 = vunpack.c.h.bf16 %v855_v5 }
  0x48   :  { %v723_v14 = vpack.c.bf16 %v366_v10, %v366_v10  ;;  %615 = vst.msk [vmem:[%s1271_s3 + $0x90] sm:$0xf] %vm578_vm0, %v721_v8  ;;  %v825_v20 = vunpack.c.l.bf16 %v856_v6  ;;  %v217_v21 = vadd.f32 %v899_v7, %v160_v15  ;;  %v218_v22 = vadd.f32 %v899_v7, %v161_v16 }
  0x49   :  { %616 = vst.msk [vmem:[%s1271_s3 + $0x94] sm:$0xf] %vm578_vm0, %v722_v13  ;;  %v826_v23 = vunpack.c.h.bf16 %v856_v6  ;;  %v829_v24 = vunpack.c.l.bf16 %v857_v12  ;;  %v219_v25 = vadd.f32 %v899_v7, %v162_v17  ;;  %v163_v26 = vmul.f32 %v821_v18, %v885_v1 }
  0x4a   :  { %617 = vst.msk [vmem:[%s1271_s3 + $0x98] sm:$0xf] %vm578_vm0, %v723_v14  ;;  %v164_v27 = vmul.f32 %v822_v19, %v885_v1  ;;  %v165_v28 = vmul.f32 %v825_v20, %v885_v1  ;;  %vm267_vm10 = vcmp.gt.f32.partialorder %v217_v21, 0.0  ;;  %v317_v29 = vmul.f32 0.01, %v217_v21 }
  0x4b   :  { %vm268_vm11 = vcmp.gt.f32.partialorder %v218_v22, 0.0  ;;  %v318_v30 = vmul.f32 0.01, %v218_v22  ;;  %vm269_vm12 = vcmp.gt.f32.partialorder %v219_v25, 0.0  ;;  %v319_v31 = vmul.f32 0.01, %v219_v25 }
  0x4c   :  { %v220_v32 = vadd.f32 %v899_v7, %v163_v26  ;;  %v221_v33 = vadd.f32 %v899_v7, %v164_v27  ;;  %v367_v34 = vsel %vm267_vm10, %v217_v21, %v317_v29  ;;  %v222_v36 = vadd.f32 %v899_v7, %v165_v28 }
  0x4d   :  { %v368_v35 = vsel %vm268_vm11, %v218_v22, %v318_v30  ;;  %v166_v37 = vmul.f32 %v826_v23, %v885_v1  ;;  %v724_v38 = vpack.c.bf16 %v367_v34, %v367_v34  ;;  %v369_v40 = vsel %vm269_vm12, %v219_v25, %v319_v31 }
  0x4e   :  { %v725_v39 = vpack.c.bf16 %v368_v35, %v368_v35  ;;  %vm270_vm13 = vcmp.gt.f32.partialorder %v220_v32, 0.0  ;;  %v726_v42 = vpack.c.bf16 %v369_v40, %v369_v40  ;;  %v320_v43 = vmul.f32 0.01, %v220_v32 }
  0x4f   :  { %vm271_vm14 = vcmp.gt.f32.partialorder %v221_v33, 0.0  ;;  %v321_v44 = vmul.f32 0.01, %v221_v33  ;;  %618 = vst.msk [vmem:[%s1271_s3 + $0x9c] sm:$0xf] %vm578_vm0, %v724_v38  ;;  %vm272_vm15 = vcmp.gt.f32.partialorder %v222_v36, 0.0  ;;  %v223_v46 = vadd.f32 %v899_v7, %v166_v37 }
  0x50   :  { %619 = vst.msk [vmem:[%s1271_s3 + $0xa0] sm:$0xf] %vm578_vm0, %v725_v39  ;;  %v322_v45 = vmul.f32 0.01, %v222_v36  ;;  %v167_v47 = vmul.f32 %v829_v24, %v885_v1  ;;  %620 = vst.msk [vmem:[%s1271_s3 + $0xa4] sm:$0xf] %vm578_vm0, %v726_v42  ;;  %v370_v48 = vsel %vm270_vm13, %v220_v32, %v320_v43  ;;  %v830_v50 = vunpack.c.h.bf16 %v857_v12 }
  0x51   :  { %v371_v49 = vsel %vm271_vm14, %v221_v33, %v321_v44  ;;  %v833_v51 = vunpack.c.l.bf16 %v858_v41  ;;  %v727_v52 = vpack.c.bf16 %v370_v48, %v370_v48  ;;  %vm273_vm1 = vcmp.gt.f32.partialorder %v223_v46, 0.0 }
  0x52   :  { %v728_v53 = vpack.c.bf16 %v371_v49, %v371_v49  ;;  %v372_v54 = vsel %vm272_vm15, %v222_v36, %v322_v45  ;;  %v323_v56 = vmul.f32 0.01, %v223_v46  ;;  %v224_v57 = vadd.f32 %v899_v7, %v167_v47 }
  0x53   :  { %v729_v55 = vpack.c.bf16 %v372_v54, %v372_v54  ;;  %v168_v58 = vmul.f32 %v830_v50, %v885_v1  ;;  %621 = vst.msk [vmem:[%s1271_s3 + $0xa8] sm:$0xf] %vm578_vm0, %v727_v52  ;;  %v169_v59 = vmul.f32 %v833_v51, %v885_v1  ;;  %v834_v60 = vunpack.c.h.bf16 %v858_v41 }
  0x54   :  { %622 = vst.msk [vmem:[%s1271_s3 + $0xac] sm:$0xf] %vm578_vm0, %v728_v53  ;;  %v373_v61 = vsel %vm273_vm1, %v223_v46, %v323_v56  ;;  %vm274_vm2 = vcmp.gt.f32.partialorder %v224_v57, 0.0  ;;  %v324_v62 = vmul.f32 0.01, %v224_v57 }
  0x55   :  { %623 = vst.msk [vmem:[%s1271_s3 + $0xb0] sm:$0xf] %vm578_vm0, %v729_v55  ;;  %v225_v63 = vadd.f32 %v899_v7, %v168_v58  ;;  %v730_v0 = vpack.c.bf16 %v373_v61, %v373_v61  ;;  %v226_v2 = vadd.f32 %v899_v7, %v169_v59  ;;  %v170_v3 = vmul.f32 %v834_v60, %v885_v1 }
  0x56   :  { %v374_v4 = vsel %vm274_vm2, %v224_v57, %v324_v62 }
  0x57   :  { %vm275_vm3 = vcmp.gt.f32.partialorder %v225_v63, 0.0  ;;  %v325_v5 = vmul.f32 0.01, %v225_v63  ;;  %624 = vst.msk [vmem:[%s1271_s3 + $0xb4] sm:$0xf] %vm578_vm0, %v730_v0  ;;  %v731_v6 = vpack.c.bf16 %v374_v4, %v374_v4  ;;  %vm276_vm4 = vcmp.gt.f32.partialorder %v226_v2, 0.0 }
  0x58   :  { %v326_v8 = vmul.f32 0.01, %v226_v2  ;;  %v227_v9 = vadd.f32 %v899_v7, %v170_v3 }
  0x59   :  { %v375_v10 = vsel %vm275_vm3, %v225_v63, %v325_v5  ;;  %625 = vst.msk [vmem:[%s1271_s3 + $0xb8] sm:$0xf] %vm578_vm0, %v731_v6 }
  0x5a   :  { %v732_v1 = vpack.c.bf16 %v375_v10, %v375_v10  ;;  %v376_v11 = vsel %vm276_vm4, %v226_v2, %v326_v8  ;;  %vm277_vm5 = vcmp.gt.f32.partialorder %v227_v9, 0.0  ;;  %v327_v12 = vmul.f32 0.01, %v227_v9 }
  0x5b   :  { %v733_v13 = vpack.c.bf16 %v376_v11, %v376_v11 }
  0x5c   :  { %626 = vst.msk [vmem:[%s1271_s3 + $0xbc] sm:$0xf] %vm578_vm0, %v732_v1  ;;  %v377_v14 = vsel %vm277_vm5, %v227_v9, %v327_v12 }
  0x5d   :  { %627 = vst.msk [vmem:[%s1271_s3 + $0xc0] sm:$0xf] %vm578_vm0, %v733_v13  ;;  %v734_v7 = vpack.c.bf16 %v377_v14, %v377_v14 }
  0x5f   :  { %628 = vst.msk [vmem:[%s1271_s3 + $0xc4] sm:$0xf] %vm578_vm0, %v734_v7 }

// kernel: conv_block_forward.4
= control target key start
LH: loop header
LB: loop body
LE: loop exit
PB: predicated region body
PF: predicated region fallthrough
CT: control target
= control target key end

     0   :  { %v1492_v0 = vmov 0.0   ;;  %vm1493_vm0 = vmmov 0   ;;  %s1923_s1 = inlined_call_operand.vmem [shape: bf16[128,128], index: 1, kind: input, shape index: {}]   ;;  %s1924_s0 = inlined_call_operand.vmem [shape: bf16[400,128], index: 0, kind: input, shape index: {}]   ;;  %s1925_s2 = inlined_call_operand.vmem [shape: bf16[400,128], index: 2, kind: output, shape index: {0}]   ;;  %s1926_s3 = inlined_call_operand.vmem [shape: f32[1,1,128], index: 3, kind: output, shape index: {1}]   ;;  %s1927_s4 = inlined_call_operand.vmem [shape: f32[1,1,128], index: 4, kind: output, shape index: {2}]  }
   0x1   :  { %1325 = vmatprep.subr.bf16.mxu0 %v1492_v0  ;;  %v1459_v1 = vld [vmem:[%s1923_s1] sm:$0xff]   ;;  %1341 = vmatprep.mubr.msk.bf16.mxu0 %vm1493_vm0, %v1492_v0  ;;  %v1460_v2 = vld [vmem:[%s1923_s1 + $0x8] sm:$0xff]   ;;  %v1461_v3 = vld [vmem:[%s1923_s1 + $0x10] sm:$0xff]   ;;  %55 = vst [vmem:[%s1926_s3] sm:$0x1] %v1492_v0 }
   0x2   :  { %1441 = vmatprep.subr.bf16.mxu1 %v1492_v0  ;;  %1393 = vmatprep.mubr.msk.bf16.mxu1 %vm1493_vm0, %v1492_v0  ;;  %v1462_v4 = vld [vmem:[%s1923_s1 + $0x18] sm:$0xff]   ;;  %v1463_v5 = vld [vmem:[%s1923_s1 + $0x20] sm:$0xff]   ;;  %v1464_v6 = vld [vmem:[%s1923_s1 + $0x28] sm:$0xff]   ;;  %56 = vst [vmem:[%s1927_s4] sm:$0x1] %v1492_v0 }
   0x3   :  { %1326 = vmatpush3.bf16.msra.mxu0 %v1459_v1  ;;  %1449 = vmatpush3.bf16.msra.mxu1 %v1459_v1  ;;  %v1465_v7 = vld [vmem:[%s1923_s1 + $0x30] sm:$0xff]   ;;  %v1466_v8 = vld [vmem:[%s1923_s1 + $0x38] sm:$0xff]   ;;  %v1467_v9 = vld [vmem:[%s1924_s0] sm:$0xff]  }
   0x4   :  { %1327 = vmatprep.subr.bf16.mxu0 %v1492_v0  ;;  %1442 = vmatprep.subr.bf16.mxu1 %v1492_v0  ;;  %v1474_v10 = vld [vmem:[%s1924_s0 + $0x68] sm:$0xff]   ;;  %v1476_v12 = vld [vmem:[%s1924_s0 + $0x70] sm:$0xff]   ;;  %v1478_v14 = vld [vmem:[%s1924_s0 + $0x78] sm:$0xff]  }
   0x5   :  { %v1468_v11 = vld [vmem:[%s1924_s0 + $0x8] sm:$0xff]   ;;  %v1469_v13 = vld [vmem:[%s1924_s0 + $0x10] sm:$0xff]   ;;  %v1470_v15 = vld [vmem:[%s1924_s0 + $0x18] sm:$0xff]  }
   0x6   :  { %v1480_v16 = vld [vmem:[%s1924_s0 + $0x80] sm:$0xff]   ;;  %v1482_v18 = vld [vmem:[%s1924_s0 + $0x88] sm:$0xff]   ;;  %v1484_v20 = vld [vmem:[%s1924_s0 + $0x90] sm:$0xff]  }
   0x7   :  { %1328 = vmatpush3.bf16.msra.mxu0 %v1460_v2  ;;  %1450 = vmatpush3.bf16.msra.mxu1 %v1460_v2  ;;  %v1471_v17 = vld [vmem:[%s1924_s0 + $0x20] sm:$0xff]   ;;  %v1472_v19 = vld [vmem:[%s1924_s0 + $0x28] sm:$0xff]   ;;  %v1473_v21 = vld [vmem:[%s1924_s0 + $0x30] sm:$0xff]  }
   0x8   :  { %1329 = vmatprep.subr.bf16.mxu0 %v1492_v0  ;;  %1443 = vmatprep.subr.bf16.mxu1 %v1492_v0  ;;  %v1486_v22 = vld [vmem:[%s1924_s0 + $0x98] sm:$0xff]   ;;  %v1487_v24 = vld [vmem:[%s1924_s0 + $0xa0] sm:$0xff]   ;;  %v1488_v26 = vld [vmem:[%s1924_s0 + $0xa8] sm:$0xff]  }
   0x9   :  { %v1475_v23 = vld [vmem:[%s1924_s0 + $0x38] sm:$0xff]   ;;  %v1477_v25 = vld [vmem:[%s1924_s0 + $0x40] sm:$0xff]   ;;  %v1479_v27 = vld [vmem:[%s1924_s0 + $0x48] sm:$0xff]  }
   0xa   :  { %v1489_v28 = vld [vmem:[%s1924_s0 + $0xb0] sm:$0xff]   ;;  %v1490_v30 = vld [vmem:[%s1924_s0 + $0xb8] sm:$0xff]   ;;  %v1491_v32 = vld [vmem:[%s1924_s0 + $0xc0] sm:$0xff]  }
   0xb   :  { %1330 = vmatpush3.bf16.msra.mxu0 %v1461_v3  ;;  %1451 = vmatpush3.bf16.msra.mxu1 %v1461_v3  ;;  %v1481_v29 = vld [vmem:[%s1924_s0 + $0x50] sm:$0xff]   ;;  %v1483_v31 = vld [vmem:[%s1924_s0 + $0x58] sm:$0xff]   ;;  %v1485_v33 = vld [vmem:[%s1924_s0 + $0x60] sm:$0xff]  }
   0xc   :  { %1331 = vmatprep.subr.bf16.mxu0 %v1492_v0  ;;  %1444 = vmatprep.subr.bf16.mxu1 %v1492_v0 }
   0xf   :  { %1332 = vmatpush3.bf16.msra.mxu0 %v1462_v4  ;;  %1452 = vmatpush3.bf16.msra.mxu1 %v1462_v4 }
  0x10   :  { %1333 = vmatprep.subr.bf16.mxu0 %v1492_v0  ;;  %1445 = vmatprep.subr.bf16.mxu1 %v1492_v0 }
  0x13   :  { %1334 = vmatpush3.bf16.msra.mxu0 %v1463_v5  ;;  %1453 = vmatpush3.bf16.msra.mxu1 %v1463_v5 }
  0x14   :  { %1335 = vmatprep.subr.bf16.mxu0 %v1492_v0  ;;  %1446 = vmatprep.subr.bf16.mxu1 %v1492_v0 }
  0x17   :  { %1336 = vmatpush3.bf16.msra.mxu0 %v1464_v6  ;;  %1454 = vmatpush3.bf16.msra.mxu1 %v1464_v6 }
  0x18   :  { %1337 = vmatprep.subr.bf16.mxu0 %v1492_v0  ;;  %1447 = vmatprep.subr.bf16.mxu1 %v1492_v0 }
  0x1b   :  { %1338 = vmatpush3.bf16.msra.mxu0 %v1465_v7  ;;  %1455 = vmatpush3.bf16.msra.mxu1 %v1465_v7 }
  0x1c   :  { %1339 = vmatprep.subr.bf16.mxu0 %v1492_v0  ;;  %1448 = vmatprep.subr.bf16.mxu1 %v1492_v0 }
  0x1f   :  { %1340 = vmatpush3.bf16.msra.mxu0 %v1466_v8  ;;  %1456 = vmatpush3.bf16.msra.mxu1 %v1466_v8 }
  0x22   :  { %1342 = vmatmul.mubr.bf16.vlgmr.msra.gmra.mrb[0].mxu0 %v1467_v9  ;;  %1394 = vmatmul.mubr.bf16.vlgmr.msra.gmra.mrb[0].mxu1 %v1474_v10 }
  0x23   :  { %1345 = vmatprep.mubr.msk.bf16.mxu0 %vm1493_vm0, %v1492_v0  ;;  %1397 = vmatprep.mubr.msk.bf16.mxu1 %vm1493_vm0, %v1492_v0 }
  0x2a   :  { %1346 = vmatmul.mubr.bf16.gmra.mrb[4].mxu0 %v1468_v11  ;;  %1398 = vmatmul.mubr.bf16.gmra.mrb[4].mxu1 %v1476_v12 }
  0x2b   :  { %1349 = vmatprep.mubr.msk.bf16.mxu0 %vm1493_vm0, %v1492_v0  ;;  %1401 = vmatprep.mubr.msk.bf16.mxu1 %vm1493_vm0, %v1492_v0 }
  0x32   :  { %1350 = vmatmul.mubr.bf16.gmra.mrb[8].mxu0 %v1469_v13  ;;  %1402 = vmatmul.mubr.bf16.gmra.mrb[8].mxu1 %v1478_v14 }
  0x33   :  { %1353 = vmatprep.mubr.msk.bf16.mxu0 %vm1493_vm0, %v1492_v0  ;;  %1405 = vmatprep.mubr.msk.bf16.mxu1 %vm1493_vm0, %v1492_v0 }
  0x3a   :  { %1354 = vmatmul.mubr.bf16.gmra.mrb[12].mxu0 %v1470_v15  ;;  %1406 = vmatmul.mubr.bf16.gmra.mrb[12].mxu1 %v1480_v16 }
  0x3b   :  { %1357 = vmatprep.mubr.msk.bf16.mxu0 %vm1493_vm0, %v1492_v0  ;;  %1409 = vmatprep.mubr.msk.bf16.mxu1 %vm1493_vm0, %v1492_v0 }
  0x42   :  { %1358 = vmatmul.mubr.bf16.gmra.mrb[16].mxu0 %v1471_v17  ;;  %1410 = vmatmul.mubr.bf16.gmra.mrb[16].mxu1 %v1482_v18 }
  0x43   :  { %1361 = vmatprep.mubr.msk.bf16.mxu0 %vm1493_vm0, %v1492_v0  ;;  %1413 = vmatprep.mubr.msk.bf16.mxu1 %vm1493_vm0, %v1492_v0 }
  0x4a   :  { %1362 = vmatmul.mubr.bf16.gmra.mrb[20].mxu0 %v1472_v19  ;;  %1414 = vmatmul.mubr.bf16.gmra.mrb[20].mxu1 %v1484_v20 }
  0x4b   :  { %1365 = vmatprep.mubr.msk.bf16.mxu0 %vm1493_vm0, %v1492_v0  ;;  %1417 = vmatprep.mubr.msk.bf16.mxu1 %vm1493_vm0, %v1492_v0 }
  0x52   :  { %1366 = vmatmul.mubr.bf16.gmra.mrb[24].mxu0 %v1473_v21  ;;  %1418 = vmatmul.mubr.bf16.gmra.mrb[24].mxu1 %v1486_v22 }
  0x53   :  { %1369 = vmatprep.mubr.msk.bf16.mxu0 %vm1493_vm0, %v1492_v0  ;;  %1421 = vmatprep.mubr.msk.bf16.mxu1 %vm1493_vm0, %v1492_v0 }
  0x5a   :  { %1370 = vmatmul.mubr.bf16.gmra.mrb[28].mxu0 %v1475_v23  ;;  %1422 = vmatmul.mubr.bf16.gmra.mrb[28].mxu1 %v1487_v24 }
  0x5b   :  { %1373 = vmatprep.mubr.msk.bf16.mxu0 %vm1493_vm0, %v1492_v0  ;;  %1425 = vmatprep.mubr.msk.bf16.mxu1 %vm1493_vm0, %v1492_v0 }
  0x62   :  { %1374 = vmatmul.mubr.bf16.gmra.mrb[32].mxu0 %v1477_v25  ;;  %1426 = vmatmul.mubr.bf16.gmra.mrb[32].mxu1 %v1488_v26 }
  0x63   :  { %1377 = vmatprep.mubr.msk.bf16.mxu0 %vm1493_vm0, %v1492_v0  ;;  %1429 = vmatprep.mubr.msk.bf16.mxu1 %vm1493_vm0, %v1492_v0 }
  0x6a   :  { %1378 = vmatmul.mubr.bf16.gmra.mrb[36].mxu0 %v1479_v27  ;;  %1430 = vmatmul.mubr.bf16.gmra.mrb[36].mxu1 %v1489_v28 }
  0x6b   :  { %1381 = vmatprep.mubr.msk.bf16.mxu0 %vm1493_vm0, %v1492_v0  ;;  %1433 = vmatprep.mubr.msk.bf16.mxu1 %vm1493_vm0, %v1492_v0 }
  0x72   :  { %1382 = vmatmul.mubr.bf16.gmra.mrb[40].mxu0 %v1481_v29  ;;  %1434 = vmatmul.mubr.bf16.gmra.mrb[40].mxu1 %v1490_v30 }
  0x73   :  { %1385 = vmatprep.mubr.msk.bf16.mxu0 %vm1493_vm0, %v1492_v0  ;;  %1437 = vmatprep.mubr.msk.bf16.mxu1 %vm1493_vm0, %v1492_v0 }
  0x7a   :  { %1386 = vmatmul.mubr.bf16.gmra.mrb[44].mxu0 %v1483_v31  ;;  %1438 = vmatmul.mubr.bf16.gmra.mrb[44].mxu1 %v1491_v32 }
  0x7b   :  { %1389 = vmatprep.mubr.msk.bf16.mxu0 %vm1493_vm0, %v1492_v0 }
  0x82   :  { %1390 = vmatmul.mubr.bf16.gmra.mrb[48].mxu0 %v1485_v33 }
  0xf5   :  { %v355_v34 = vpop.f32.mrb[0].mxu0  ;;  %v1684_v35 = vpop.f32.mrb[0].mxu1 }
  0xf6   :  { %v1343_v36 = vpop.f32.mrb[1].mxu0  ;;  %v1395_v37 = vpop.f32.mrb[1].mxu1  ;;  %v863_v38 = vmul.f32 %v355_v34, %v355_v34 }
  0xf7   :  { %v358_v39 = vpop.f32.mrb[2].mxu0  ;;  %v1686_v40 = vpop.f32.mrb[2].mxu1 }
  0xf8   :  { %v1146_v41 = vpack.c.bf16 %v358_v39, %v355_v34  ;;  %v805_v42 = vadd.f32 %v358_v39, %v355_v34  ;;  %v864_v43 = vmul.f32 %v358_v39, %v358_v39  ;;  %v1344_v44 = vpop.f32.mrb[3].mxu0  ;;  %v1211_v45 = vpack.c.bf16 %v1686_v40, %v1684_v35  ;;  %v1396_v46 = vpop.f32.mrb[3].mxu1 }
  0xfa   :  { %1147 = vst [vmem:[%s1925_s2] sm:$0xff] %v1146_v41   ;;  %v913_v47 = vadd.f32 %v864_v43, %v863_v38  ;;  %1280 = vst [vmem:[%s1925_s2 + $0x68] sm:$0xff] %v1211_v45  }
  0xfd   :  { %v363_v48 = vpop.f32.mrb[4].mxu0  ;;  %v1696_v49 = vpop.f32.mrb[4].mxu1 }
  0xfe   :  { %v806_v50 = vadd.f32 %v805_v42, %v363_v48  ;;  %v865_v51 = vmul.f32 %v363_v48, %v363_v48  ;;  %v1347_v52 = vpop.f32.mrb[5].mxu0  ;;  %v1399_v53 = vpop.f32.mrb[5].mxu1 }
  0xff   :  { %v366_v54 = vpop.f32.mrb[6].mxu0  ;;  %v1698_v55 = vpop.f32.mrb[6].mxu1 }
 0x100   :  { %v914_v56 = vadd.f32 %v913_v47, %v865_v51  ;;  %v1151_v57 = vpack.c.bf16 %v366_v54, %v363_v48  ;;  %v807_v58 = vadd.f32 %v806_v50, %v366_v54  ;;  %v866_v59 = vmul.f32 %v366_v54, %v366_v54  ;;  %v1348_v60 = vpop.f32.mrb[7].mxu0  ;;  %v1400_v61 = vpop.f32.mrb[7].mxu1 }
 0x101   :  { %v1216_v62 = vpack.c.bf16 %v1698_v55, %v1696_v49 }
 0x102   :  { %1268 = vst [vmem:[%s1925_s2 + $0x8] sm:$0xff] %v1151_v57   ;;  %v915_v63 = vadd.f32 %v914_v56, %v866_v59 }
 0x103   :  { %1281 = vst [vmem:[%s1925_s2 + $0x70] sm:$0xff] %v1216_v62  }
 0x105   :  { %v371_v1 = vpop.f32.mrb[8].mxu0  ;;  %v1708_v2 = vpop.f32.mrb[8].mxu1 }
 0x106   :  { %v808_v3 = vadd.f32 %v807_v58, %v371_v1  ;;  %v867_v4 = vmul.f32 %v371_v1, %v371_v1  ;;  %v1351_v5 = vpop.f32.mrb[9].mxu0  ;;  %v1403_v6 = vpop.f32.mrb[9].mxu1 }
 0x107   :  { %v374_v7 = vpop.f32.mrb[10].mxu0  ;;  %v1710_v8 = vpop.f32.mrb[10].mxu1 }
 0x108   :  { %v916_v9 = vadd.f32 %v915_v63, %v867_v4  ;;  %v1156_v10 = vpack.c.bf16 %v374_v7, %v371_v1  ;;  %v809_v11 = vadd.f32 %v808_v3, %v374_v7  ;;  %v868_v12 = vmul.f32 %v374_v7, %v374_v7  ;;  %v1352_v13 = vpop.f32.mrb[11].mxu0  ;;  %v1404_v14 = vpop.f32.mrb[11].mxu1 }
 0x109   :  { %v1221_v15 = vpack.c.bf16 %v1710_v8, %v1708_v2 }
 0x10a   :  { %1269 = vst [vmem:[%s1925_s2 + $0x10] sm:$0xff] %v1156_v10   ;;  %v917_v16 = vadd.f32 %v916_v9, %v868_v12 }
 0x10b   :  { %1282 = vst [vmem:[%s1925_s2 + $0x78] sm:$0xff] %v1221_v15  }
 0x10d   :  { %v379_v17 = vpop.f32.mrb[12].mxu0  ;;  %v1728_v18 = vpop.f32.mrb[12].mxu1 }
 0x10e   :  { %v810_v19 = vadd.f32 %v809_v11, %v379_v17  ;;  %v869_v20 = vmul.f32 %v379_v17, %v379_v17  ;;  %v1355_v21 = vpop.f32.mrb[13].mxu0  ;;  %v1407_v22 = vpop.f32.mrb[13].mxu1 }
 0x10f   :  { %v382_v23 = vpop.f32.mrb[14].mxu0  ;;  %v1730_v24 = vpop.f32.mrb[14].mxu1 }
 0x110   :  { %v918_v0 = vadd.f32 %v917_v16, %v869_v20  ;;  %v1161_v25 = vpack.c.bf16 %v382_v23, %v379_v17  ;;  %v811_v26 = vadd.f32 %v810_v19, %v382_v23  ;;  %v870_v27 = vmul.f32 %v382_v23, %v382_v23  ;;  %v1356_v28 = vpop.f32.mrb[15].mxu0  ;;  %v1408_v29 = vpop.f32.mrb[15].mxu1 }
 0x111   :  { %v1226_v30 = vpack.c.bf16 %v1730_v24, %v1728_v18 }
 0x112   :  { %1270 = vst [vmem:[%s1925_s2 + $0x18] sm:$0xff] %v1161_v25   ;;  %v919_v31 = vadd.f32 %v918_v0, %v870_v27 }
 0x113   :  { %1283 = vst [vmem:[%s1925_s2 + $0x80] sm:$0xff] %v1226_v30  }
 0x115   :  { %v387_v32 = vpop.f32.mrb[16].mxu0  ;;  %v1740_v33 = vpop.f32.mrb[16].mxu1 }
 0x116   :  { %v812_v34 = vadd.f32 %v811_v26, %v387_v32  ;;  %v871_v36 = vmul.f32 %v387_v32, %v387_v32  ;;  %v1359_v37 = vpop.f32.mrb[17].mxu0  ;;  %v1411_v38 = vpop.f32.mrb[17].mxu1 }
 0x117   :  { %v390_v39 = vpop.f32.mrb[18].mxu0  ;;  %v1742_v41 = vpop.f32.mrb[18].mxu1 }
 0x118   :  { %v920_v42 = vadd.f32 %v919_v31, %v871_v36  ;;  %v1166_v43 = vpack.c.bf16 %v390_v39, %v387_v32  ;;  %v813_v44 = vadd.f32 %v812_v34, %v390_v39  ;;  %v872_v45 = vmul.f32 %v390_v39, %v390_v39  ;;  %v1360_v46 = vpop.f32.mrb[19].mxu0  ;;  %v1412_v47 = vpop.f32.mrb[19].mxu1 }
 0x119   :  { %v1231_v48 = vpack.c.bf16 %v1742_v41, %v1740_v33 }
 0x11a   :  { %1271 = vst [vmem:[%s1925_s2 + $0x20] sm:$0xff] %v1166_v43   ;;  %v921_v50 = vadd.f32 %v920_v42, %v872_v45 }
 0x11b   :  { %1284 = vst [vmem:[%s1925_s2 + $0x88] sm:$0xff] %v1231_v48  }
 0x11d   :  { %v395_v51 = vpop.f32.mrb[20].mxu0  ;;  %v1752_v52 = vpop.f32.mrb[20].mxu1 }
 0x11e   :  { %v814_v53 = vadd.f32 %v813_v44, %v395_v51  ;;  %v873_v54 = vmul.f32 %v395_v51, %v395_v51  ;;  %v1363_v56 = vpop.f32.mrb[21].mxu0  ;;  %v1415_v57 = vpop.f32.mrb[21].mxu1 }
 0x11f   :  { %v398_v58 = vpop.f32.mrb[22].mxu0  ;;  %v1754_v59 = vpop.f32.mrb[22].mxu1 }
 0x120   :  { %v922_v60 = vadd.f32 %v921_v50, %v873_v54  ;;  %v1171_v61 = vpack.c.bf16 %v398_v58, %v395_v51  ;;  %v815_v62 = vadd.f32 %v814_v53, %v398_v58  ;;  %v874_v63 = vmul.f32 %v398_v58, %v398_v58  ;;  %v1364_v1 = vpop.f32.mrb[23].mxu0  ;;  %v1416_v3 = vpop.f32.mrb[23].mxu1 }
 0x121   :  { %v1236_v4 = vpack.c.bf16 %v1754_v59, %v1752_v52 }
 0x122   :  { %1272 = vst [vmem:[%s1925_s2 + $0x28] sm:$0xff] %v1171_v61   ;;  %v923_v5 = vadd.f32 %v922_v60, %v874_v63 }
 0x123   :  { %1285 = vst [vmem:[%s1925_s2 + $0x90] sm:$0xff] %v1236_v4  }
 0x125   :  { %v403_v6 = vpop.f32.mrb[24].mxu0  ;;  %v1764_v7 = vpop.f32.mrb[24].mxu1 }
 0x126   :  { %v816_v9 = vadd.f32 %v815_v62, %v403_v6  ;;  %v875_v10 = vmul.f32 %v403_v6, %v403_v6  ;;  %v1367_v11 = vpop.f32.mrb[25].mxu0  ;;  %v1419_v12 = vpop.f32.mrb[25].mxu1 }
 0x127   :  { %v406_v13 = vpop.f32.mrb[26].mxu0  ;;  %v1766_v14 = vpop.f32.mrb[26].mxu1 }
 0x128   :  { %v924_v15 = vadd.f32 %v923_v5, %v875_v10  ;;  %v1176_v16 = vpack.c.bf16 %v406_v13, %v403_v6  ;;  %v817_v17 = vadd.f32 %v816_v9, %v406_v13  ;;  %v876_v19 = vmul.f32 %v406_v13, %v406_v13  ;;  %v1368_v20 = vpop.f32.mrb[27].mxu0  ;;  %v1420_v21 = vpop.f32.mrb[27].mxu1 }
 0x129   :  { %v1241_v22 = vpack.c.bf16 %v1766_v14, %v1764_v7 }
 0x12a   :  { %1273 = vst [vmem:[%s1925_s2 + $0x30] sm:$0xff] %v1176_v16   ;;  %v925_v23 = vadd.f32 %v924_v15, %v876_v19 }
 0x12b   :  { %1286 = vst [vmem:[%s1925_s2 + $0x98] sm:$0xff] %v1241_v22  }
 0x12d   :  { %v411_v0 = vpop.f32.mrb[28].mxu0  ;;  %v1776_v25 = vpop.f32.mrb[28].mxu1 }
 0x12e   :  { %v818_v26 = vadd.f32 %v817_v17, %v411_v0  ;;  %v877_v27 = vmul.f32 %v411_v0, %v411_v0  ;;  %v1371_v28 = vpop.f32.mrb[29].mxu0  ;;  %v1423_v29 = vpop.f32.mrb[29].mxu1 }
 0x12f   :  { %v414_v30 = vpop.f32.mrb[30].mxu0  ;;  %v1778_v31 = vpop.f32.mrb[30].mxu1 }
 0x130   :  { %v926_v32 = vadd.f32 %v925_v23, %v877_v27  ;;  %v1181_v34 = vpack.c.bf16 %v414_v30, %v411_v0  ;;  %v819_v36 = vadd.f32 %v818_v26, %v414_v30  ;;  %v878_v37 = vmul.f32 %v414_v30, %v414_v30  ;;  %v1372_v38 = vpop.f32.mrb[31].mxu0  ;;  %v1424_v39 = vpop.f32.mrb[31].mxu1 }
 0x131   :  { %v1246_v42 = vpack.c.bf16 %v1778_v31, %v1776_v25 }
 0x132   :  { %1274 = vst [vmem:[%s1925_s2 + $0x38] sm:$0xff] %v1181_v34   ;;  %v927_v43 = vadd.f32 %v926_v32, %v878_v37 }
 0x133   :  { %1287 = vst [vmem:[%s1925_s2 + $0xa0] sm:$0xff] %v1246_v42  }
 0x135   :  { %v419_v44 = vpop.f32.mrb[32].mxu0  ;;  %v1788_v45 = vpop.f32.mrb[32].mxu1 }
 0x136   :  { %v820_v46 = vadd.f32 %v819_v36, %v419_v44  ;;  %v879_v47 = vmul.f32 %v419_v44, %v419_v44  ;;  %v1375_v48 = vpop.f32.mrb[33].mxu0  ;;  %v1427_v50 = vpop.f32.mrb[33].mxu1 }
 0x137   :  { %v422_v51 = vpop.f32.mrb[34].mxu0  ;;  %v1790_v53 = vpop.f32.mrb[34].mxu1 }
 0x138   :  { %v928_v54 = vadd.f32 %v927_v43, %v879_v47  ;;  %v1186_v56 = vpack.c.bf16 %v422_v51, %v419_v44  ;;  %v821_v57 = vadd.f32 %v820_v46, %v422_v51  ;;  %v880_v58 = vmul.f32 %v422_v51, %v422_v51  ;;  %v1376_v60 = vpop.f32.mrb[35].mxu0  ;;  %v1428_v61 = vpop.f32.mrb[35].mxu1 }
 0x139   :  { %v1251_v62 = vpack.c.bf16 %v1790_v53, %v1788_v45 }
 0x13a   :  { %1275 = vst [vmem:[%s1925_s2 + $0x40] sm:$0xff] %v1186_v56   ;;  %v929_v63 = vadd.f32 %v928_v54, %v880_v58 }
 0x13b   :  { %1288 = vst [vmem:[%s1925_s2 + $0xa8] sm:$0xff] %v1251_v62  }
 0x13d   :  { %v427_v1 = vpop.f32.mrb[36].mxu0  ;;  %v1800_v3 = vpop.f32.mrb[36].mxu1 }
 0x13e   :  { %v822_v4 = vadd.f32 %v821_v57, %v427_v1  ;;  %v881_v5 = vmul.f32 %v427_v1, %v427_v1  ;;  %v1379_v6 = vpop.f32.mrb[37].mxu0  ;;  %v1431_v9 = vpop.f32.mrb[37].mxu1 }
 0x13f   :  { %v430_v10 = vpop.f32.mrb[38].mxu0  ;;  %v1802_v11 = vpop.f32.mrb[38].mxu1 }
 0x140   :  { %v930_v12 = vadd.f32 %v929_v63, %v881_v5  ;;  %v1191_v13 = vpack.c.bf16 %v430_v10, %v427_v1  ;;  %v823_v15 = vadd.f32 %v822_v4, %v430_v10  ;;  %v882_v16 = vmul.f32 %v430_v10, %v430_v10  ;;  %v1380_v17 = vpop.f32.mrb[39].mxu0  ;;  %v1432_v19 = vpop.f32.mrb[39].mxu1 }
 0x141   :  { %v1256_v20 = vpack.c.bf16 %v1802_v11, %v1800_v3 }
 0x142   :  { %1276 = vst [vmem:[%s1925_s2 + $0x48] sm:$0xff] %v1191_v13   ;;  %v931_v21 = vadd.f32 %v930_v12, %v882_v16 }
 0x143   :  { %1289 = vst [vmem:[%s1925_s2 + $0xb0] sm:$0xff] %v1256_v20   ;;  %v889_v20 = vmul.f32 %v1684_v35, %v1684_v35 }
 0x145   :  { %v435_v22 = vpop.f32.mrb[40].mxu0  ;;  %v1812_v23 = vpop.f32.mrb[40].mxu1 }
 0x146   :  { %v824_v0 = vadd.f32 %v823_v15, %v435_v22  ;;  %v883_v26 = vmul.f32 %v435_v22, %v435_v22  ;;  %v1383_v27 = vpop.f32.mrb[41].mxu0  ;;  %v1435_v28 = vpop.f32.mrb[41].mxu1 }
 0x147   :  { %v438_v29 = vpop.f32.mrb[42].mxu0  ;;  %v1814_v30 = vpop.f32.mrb[42].mxu1  ;;  %v891_v28 = vmul.f32 %v1696_v49, %v1696_v49 }
 0x148   :  { %v932_v32 = vadd.f32 %v931_v21, %v883_v26  ;;  %v1196_v34 = vpack.c.bf16 %v438_v29, %v435_v22  ;;  %v825_v36 = vadd.f32 %v824_v0, %v438_v29  ;;  %v884_v37 = vmul.f32 %v438_v29, %v438_v29  ;;  %v1384_v38 = vpop.f32.mrb[43].mxu0  ;;  %v1436_v39 = vpop.f32.mrb[43].mxu1 }
 0x149   :  { %v1261_v42 = vpack.c.bf16 %v1814_v30, %v1812_v23  ;;  %v890_v0 = vmul.f32 %v1686_v40, %v1686_v40 }
 0x14a   :  { %1277 = vst [vmem:[%s1925_s2 + $0x50] sm:$0xff] %v1196_v34   ;;  %v933_v43 = vadd.f32 %v932_v32, %v884_v37  ;;  %v892_v34 = vmul.f32 %v1698_v55, %v1698_v55 }
 0x14b   :  { %1290 = vst [vmem:[%s1925_s2 + $0xb8] sm:$0xff] %v1261_v42  }
 0x14d   :  { %v443_v44 = vpop.f32.mrb[44].mxu0  ;;  %v1824_v46 = vpop.f32.mrb[44].mxu1 }
 0x14e   :  { %v826_v47 = vadd.f32 %v825_v36, %v443_v44  ;;  %v885_v48 = vmul.f32 %v443_v44, %v443_v44  ;;  %v1387_v50 = vpop.f32.mrb[45].mxu0  ;;  %v1439_v51 = vpop.f32.mrb[45].mxu1 }
 0x14f   :  { %v446_v54 = vpop.f32.mrb[46].mxu0  ;;  %v1826_v56 = vpop.f32.mrb[46].mxu1 }
 0x150   :  { %v934_v57 = vadd.f32 %v933_v43, %v885_v48  ;;  %v1201_v58 = vpack.c.bf16 %v446_v54, %v443_v44  ;;  %v827_v60 = vadd.f32 %v826_v47, %v446_v54  ;;  %v886_v61 = vmul.f32 %v446_v54, %v446_v54  ;;  %v1388_v62 = vpop.f32.mrb[47].mxu0  ;;  %v1440_v63 = vpop.f32.mrb[47].mxu1 }
 0x151   :  { %v1266_v1 = vpack.c.bf16 %v1826_v56, %v1824_v46 }
 0x152   :  { %1278 = vst [vmem:[%s1925_s2 + $0x58] sm:$0xff] %v1201_v58   ;;  %v935_v4 = vadd.f32 %v934_v57, %v886_v61 }
 0x153   :  { %1291 = vst [vmem:[%s1925_s2 + $0xc0] sm:$0xff] %v1266_v1   ;;  %v901_v1 = vmul.f32 %v1764_v7, %v1764_v7 }
 0x155   :  { %v451_v5 = vpop.f32.mrb[48].mxu0 }
 0x156   :  { %v828_v6 = vadd.f32 %v827_v60, %v451_v5  ;;  %v887_v9 = vmul.f32 %v451_v5, %v451_v5  ;;  %v1391_v10 = vpop.f32.mrb[49].mxu0 }
 0x157   :  { %v454_v12 = vpop.f32.mrb[50].mxu0  ;;  %v903_v10 = vmul.f32 %v1776_v25, %v1776_v25 }
 0x158   :  { %v936_v13 = vadd.f32 %v935_v4, %v887_v9  ;;  %v1206_v15 = vpack.c.bf16 %v454_v12, %v451_v5  ;;  %v829_v16 = vadd.f32 %v828_v6, %v454_v12  ;;  %v888_v17 = vmul.f32 %v454_v12, %v454_v12  ;;  %v1392_v19 = vpop.f32.mrb[51].mxu0 }
 0x159   :  { %v902_v6 = vmul.f32 %v1766_v14, %v1766_v14  ;;  %v906_v19 = vmul.f32 %v1790_v53, %v1790_v53 }
 0x15a   :  { %1279 = vst [vmem:[%s1925_s2 + $0x60] sm:$0xff] %v1206_v15   ;;  %v830_v21 = vadd.f32 %v829_v16, %v1684_v35  ;;  %v937_v22 = vadd.f32 %v936_v13, %v888_v17  ;;  %v893_v35 = vmul.f32 %v1708_v2, %v1708_v2  ;;  %v904_v13 = vmul.f32 %v1778_v31, %v1778_v31 }
 0x15b   :  { %v905_v16 = vmul.f32 %v1788_v45, %v1788_v45 }
 0x15c   :  { %v831_v26 = vadd.f32 %v830_v21, %v1686_v40  ;;  %v938_v27 = vadd.f32 %v937_v22, %v889_v20  ;;  %v894_v40 = vmul.f32 %v1710_v8, %v1710_v8  ;;  %v907_v21 = vmul.f32 %v1800_v3, %v1800_v3 }
 0x15e   :  { %v832_v29 = vadd.f32 %v831_v26, %v1696_v49  ;;  %v939_v32 = vadd.f32 %v938_v27, %v890_v0  ;;  %v895_v49 = vmul.f32 %v1728_v18, %v1728_v18  ;;  %v908_v0 = vmul.f32 %v1802_v11, %v1802_v11 }
 0x15f   :  { %v909_v27 = vmul.f32 %v1812_v23, %v1812_v23 }
 0x160   :  { %v833_v36 = vadd.f32 %v832_v29, %v1698_v55  ;;  %v940_v37 = vadd.f32 %v939_v32, %v891_v28  ;;  %v896_v55 = vmul.f32 %v1730_v24, %v1730_v24  ;;  %v910_v29 = vmul.f32 %v1814_v30, %v1814_v30 }
 0x162   :  { %v834_v38 = vadd.f32 %v833_v36, %v1708_v2  ;;  %v941_v39 = vadd.f32 %v940_v37, %v892_v34  ;;  %v897_v2 = vmul.f32 %v1740_v33, %v1740_v33  ;;  %v912_v37 = vmul.f32 %v1826_v56, %v1826_v56 }
 0x164   :  { %v835_v42 = vadd.f32 %v834_v38, %v1710_v8  ;;  %v942_v43 = vadd.f32 %v941_v39, %v893_v35  ;;  %v898_v8 = vmul.f32 %v1742_v41, %v1742_v41 }
 0x166   :  { %v943_v44 = vadd.f32 %v942_v43, %v894_v40  ;;  %v836_v47 = vadd.f32 %v835_v42, %v1728_v18  ;;  %v899_v18 = vmul.f32 %v1752_v52, %v1752_v52 }
 0x168   :  { %v837_v48 = vadd.f32 %v836_v47, %v1730_v24  ;;  %v944_v50 = vadd.f32 %v943_v44, %v895_v49  ;;  %v900_v24 = vmul.f32 %v1754_v59, %v1754_v59 }
 0x16a   :  { %v838_v51 = vadd.f32 %v837_v48, %v1740_v33  ;;  %v945_v54 = vadd.f32 %v944_v50, %v896_v55 }
 0x16c   :  { %v839_v57 = vadd.f32 %v838_v51, %v1742_v41  ;;  %v946_v58 = vadd.f32 %v945_v54, %v897_v2 }
 0x16e   :  { %v840_v60 = vadd.f32 %v839_v57, %v1752_v52  ;;  %v947_v61 = vadd.f32 %v946_v58, %v898_v8 }
 0x170   :  { %v841_v62 = vadd.f32 %v840_v60, %v1754_v59  ;;  %v948_v63 = vadd.f32 %v947_v61, %v899_v18 }
 0x172   :  { %v842_v33 = vadd.f32 %v841_v62, %v1764_v7  ;;  %v949_v4 = vadd.f32 %v948_v63, %v900_v24 }
 0x174   :  { %v950_v41 = vadd.f32 %v949_v4, %v901_v1  ;;  %v843_v5 = vadd.f32 %v842_v33, %v1766_v14 }
 0x176   :  { %v951_v52 = vadd.f32 %v950_v41, %v902_v6  ;;  %v844_v9 = vadd.f32 %v843_v5, %v1776_v25 }
 0x178   :  { %v952_v59 = vadd.f32 %v951_v52, %v903_v10  ;;  %v845_v12 = vadd.f32 %v844_v9, %v1778_v31 }
 0x17a   :  { %v953_v7 = vadd.f32 %v952_v59, %v904_v13  ;;  %v846_v15 = vadd.f32 %v845_v12, %v1788_v45 }
 0x17c   :  { %v954_v17 = vadd.f32 %v953_v7, %v905_v16  ;;  %v847_v14 = vadd.f32 %v846_v15, %v1790_v53 }
 0x17e   :  { %v955_v20 = vadd.f32 %v954_v17, %v906_v19  ;;  %v848_v25 = vadd.f32 %v847_v14, %v1800_v3  ;;  %v911_v3 = vmul.f32 %v1824_v46, %v1824_v46 }
 0x180   :  { %v956_v22 = vadd.f32 %v955_v20, %v907_v21  ;;  %v849_v31 = vadd.f32 %v848_v25, %v1802_v11 }
 0x182   :  { %v957_v26 = vadd.f32 %v956_v22, %v908_v0  ;;  %v850_v45 = vadd.f32 %v849_v31, %v1812_v23 }
 0x184   :  { %v958_v28 = vadd.f32 %v957_v26, %v909_v27  ;;  %v851_v53 = vadd.f32 %v850_v45, %v1814_v30 }
 0x186   :  { %v959_v32 = vadd.f32 %v958_v28, %v910_v29  ;;  %v852_v34 = vadd.f32 %v851_v53, %v1824_v46  ;;  %v804_v46 = vld [vmem:[%s1926_s3] sm:$0x1] }
 0x188   :  { %v960_v36 = vadd.f32 %v959_v32, %v911_v3  ;;  %v853_v11 = vadd.f32 %v852_v34, %v1826_v56  ;;  %v862_v56 = vld [vmem:[%s1927_s4] sm:$0x1] }
 0x18a   :  { %v854_v35 = vrot.slane %v853_v11, 4  ;;  %v961_v23 = vadd.f32 %v960_v36, %v912_v37 }
 0x18c   :  { %v855_v38 = vadd.f32 %v854_v35, %v853_v11  ;;  %v962_v39 = vrot.slane %v961_v23, 4 }
 0x18e   :  { %v856_v40 = vrot.slane %v855_v38, 2  ;;  %v963_v42 = vadd.f32 %v962_v39, %v961_v23 }
 0x190   :  { %v857_v43 = vadd.f32 %v856_v40, %v855_v38  ;;  %v964_v30 = vrot.slane %v963_v42, 2 }
 0x192   :  { %v858_v49 = vrot.slane %v857_v43, 1  ;;  %v965_v44 = vadd.f32 %v964_v30, %v963_v42 }
 0x194   :  { %v859_v47 = vadd.f32 %v858_v49, %v857_v43  ;;  %v966_v55 = vrot.slane %v965_v44, 1 }
 0x196   :  { %v860_v48 = vadd.f32 %v859_v47, %v804_v46  ;;  %v967_v50 = vadd.f32 %v966_v55, %v965_v44 }
 0x198   :  { %861 = vst [vmem:[%s1926_s3] sm:$0x1] %v860_v48  ;;  %v968_v2 = vadd.f32 %v967_v50, %v862_v56 }
 0x19a   :  { %969 = vst [vmem:[%s1927_s4] sm:$0x1] %v968_v2 }

// kernel: conv_block_forward.7
= control target key start
LH: loop header
LB: loop body
LE: loop exit
PB: predicated region body
PF: predicated region fallthrough
CT: control target
= control target key end

     0   :  { %v772_v2 = vmov 0.0   ;;  %vm773_vm0 = vmmov 0   ;;  %s1022_s0 = inlined_call_operand.vmem [shape: bf16[288,128], index: 0, kind: input, shape index: {}]   ;;  %s1023_s1 = inlined_call_operand.vmem [shape: f32[1,128], index: 1, kind: input, shape index: {}]   ;;  %s1024_s2 = inlined_call_operand.vmem [shape: f32[1,128], index: 2, kind: input, shape index: {}]   ;;  %s1025_s3 = inlined_call_operand.vmem [shape: bf16[72,288], index: 3, kind: input, shape index: {}]   ;;  %s1026_s4 = inlined_call_operand.vmem [shape: f32[72,128], index: 4, kind: output, shape index: {}]  }
   0x1   :  { %v664_v0 = vld [vmem:[%s1022_s0 + $0x40] sm:$0xff]   ;;  %727 = vmatprep.subr.bf16.mxu1 %v772_v2  ;;  %731 = vmatprep.mubr.msk.bf16.mxu1 %vm773_vm0, %v772_v2  ;;  %v665_v6 = vld [vmem:[%s1022_s0 + $0x48] sm:$0xff]   ;;  %v666_v31 = vld [vmem:[%s1022_s0 + $0x50] sm:$0xff]  }
   0x2   :  { %v805_v1 = vld [vmem:[%s1023_s1] ss:$0 sm:$0xff]  ;;  %v619_v3 = vunpack.c.l.bf16 %v664_v0  ;;  %v620_v4 = vunpack.c.h.bf16 %v664_v0  ;;  %v657_v7 = vld [vmem:[%s1022_s0 + $0x8] sm:$0xff]   ;;  %v623_v11 = vunpack.c.l.bf16 %v665_v6  ;;  %v624_v12 = vunpack.c.h.bf16 %v665_v6  ;;  %v658_v36 = vld [vmem:[%s1022_s0 + $0x10] sm:$0xff]  }
   0x3   :  { %v586_v5 = vld [vmem:[%s1022_s0] sm:$0xff]   ;;  %v591_v15 = vunpack.c.l.bf16 %v657_v7  ;;  %v592_v16 = vunpack.c.h.bf16 %v657_v7  ;;  %v627_v47 = vunpack.c.l.bf16 %v666_v31  ;;  %v628_v48 = vunpack.c.h.bf16 %v666_v31  ;;  %v667_v50 = vld [vmem:[%s1022_s0 + $0x58] sm:$0xff]  }
   0x4   :  { %v822_v8 = vld [vmem:[%s1024_s2] ss:$0 sm:$0xff]  ;;  %v587_v9 = vunpack.c.l.bf16 %v586_v5  ;;  %v588_v10 = vunpack.c.h.bf16 %v586_v5  ;;  %v113_v13 = vmul.f32 %v619_v3, %v805_v1  ;;  %v114_v14 = vmul.f32 %v620_v4, %v805_v1  ;;  %v755_v41 = vld [vmem:[%s1025_s3 + $0x4] ss:$12 sps:$4 sm:$0xff]   ;;  %v659_v7 = vld [vmem:[%s1022_s0 + $0x18] sm:$0xff]  }
   0x5   :  { %v115_v19 = vmul.f32 %v623_v11, %v805_v1  ;;  %v116_v20 = vmul.f32 %v624_v12, %v805_v1  ;;  %v99_v23 = vmul.f32 %v591_v15, %v805_v1  ;;  %v100_v24 = vmul.f32 %v592_v16, %v805_v1  ;;  %438 = vmatprep.mubr.bf16.mxu0 %v755_v41 }
   0x6   :  { %v97_v17 = vmul.f32 %v587_v9, %v805_v1  ;;  %v98_v18 = vmul.f32 %v588_v10, %v805_v1  ;;  %v156_v21 = vadd.f32 %v822_v8, %v113_v13  ;;  %v157_v22 = vadd.f32 %v822_v8, %v114_v14 }
   0x7   :  { %v158_v27 = vadd.f32 %v822_v8, %v115_v19  ;;  %v159_v28 = vadd.f32 %v822_v8, %v116_v20  ;;  %v142_v44 = vadd.f32 %v822_v8, %v99_v23  ;;  %v143_v45 = vadd.f32 %v822_v8, %v100_v24 }
   0x8   :  { %v140_v25 = vadd.f32 %v822_v8, %v97_v17  ;;  %v141_v26 = vadd.f32 %v822_v8, %v98_v18  ;;  %vm192_vm1 = vcmp.gt.f32.partialorder %v156_v21, 0.0  ;;  %vm193_vm2 = vcmp.gt.f32.partialorder %v157_v22, 0.0  ;;  %v668_v18 = vld [vmem:[%s1022_s0 + $0x60] sm:$0xff]  }
   0x9   :  { %v228_v29 = vmul.f32 0.01, %v156_v21  ;;  %v229_v30 = vmul.f32 0.01, %v157_v22  ;;  %vm194_vm5 = vcmp.gt.f32.partialorder %v158_v27, 0.0  ;;  %vm195_vm6 = vcmp.gt.f32.partialorder %v159_v28, 0.0 }
   0xa   :  { %vm176_vm3 = vcmp.gt.f32.partialorder %v140_v25, 0.0  ;;  %vm177_vm4 = vcmp.gt.f32.partialorder %v141_v26, 0.0  ;;  %v212_v32 = vmul.f32 0.01, %v140_v25  ;;  %v213_v33 = vmul.f32 0.01, %v141_v26 }
   0xb   :  { %v264_v34 = vsel %vm192_vm1, %v156_v21, %v228_v29  ;;  %v265_v35 = vsel %vm193_vm2, %v157_v22, %v229_v30  ;;  %v230_v40 = vmul.f32 0.01, %v158_v27  ;;  %v231_v43 = vmul.f32 0.01, %v159_v28  ;;  %v660_v29 = vld [vmem:[%s1022_s0 + $0x20] sm:$0xff]   ;;  %v669_v30 = vld [vmem:[%s1022_s0 + $0x68] sm:$0xff]  }
   0xc   :  { %v310_v37 = vpack.c.bf16 %v265_v35, %v264_v34  ;;  %v248_v38 = vsel %vm176_vm3, %v140_v25, %v212_v32  ;;  %v249_v39 = vsel %vm177_vm4, %v141_v26, %v213_v33  ;;  %v595_v49 = vunpack.c.l.bf16 %v658_v36 }
   0xd   :  { %v302_v42 = vpack.c.bf16 %v249_v39, %v248_v38  ;;  %v266_v46 = vsel %vm194_vm5, %v158_v27, %v230_v40  ;;  %v267_v51 = vsel %vm195_vm6, %v159_v28, %v231_v43  ;;  %vm178_vm7 = vcmp.gt.f32.partialorder %v142_v44, 0.0 }
   0xe   :  { %674 = vmatprep.subr.bf16.mxu0 %v310_v37  ;;  %vm179_vm8 = vcmp.gt.f32.partialorder %v143_v45, 0.0  ;;  %v214_v52 = vmul.f32 0.01, %v142_v44  ;;  %v311_v53 = vpack.c.bf16 %v267_v51, %v266_v46  ;;  %v215_v54 = vmul.f32 0.01, %v143_v45 }
   0xf   :  { %675 = vmatpush3.bf16.msra.mxu0 %v302_v42  ;;  %v117_v55 = vmul.f32 %v627_v47, %v805_v1  ;;  %v118_v56 = vmul.f32 %v628_v48, %v805_v1  ;;  %v596_v58 = vunpack.c.h.bf16 %v658_v36  ;;  %v101_v59 = vmul.f32 %v595_v49, %v805_v1 }
  0x10   :  { %v250_v57 = vsel %vm178_vm7, %v142_v44, %v214_v52  ;;  %v631_v60 = vunpack.c.l.bf16 %v667_v50  ;;  %676 = vmatprep.subr.bf16.mxu0 %v311_v53  ;;  %v251_v61 = vsel %vm179_vm8, %v143_v45, %v215_v54  ;;  %v632_v0 = vunpack.c.h.bf16 %v667_v50 }
  0x11   :  { %v160_v62 = vadd.f32 %v822_v8, %v117_v55  ;;  %v161_v63 = vadd.f32 %v822_v8, %v118_v56  ;;  %v303_v3 = vpack.c.bf16 %v251_v61, %v250_v57  ;;  %v102_v4 = vmul.f32 %v596_v58, %v805_v1  ;;  %v661_v58 = vld [vmem:[%s1022_s0 + $0x28] sm:$0xff]  }
  0x12   :  { %v144_v5 = vadd.f32 %v822_v8, %v101_v59  ;;  %v119_v6 = vmul.f32 %v631_v60, %v805_v1  ;;  %v120_v13 = vmul.f32 %v632_v0, %v805_v1  ;;  %v599_v17 = vunpack.c.l.bf16 %v659_v7 }
  0x13   :  { %vm196_vm9 = vcmp.gt.f32.partialorder %v160_v62, 0.0  ;;  %vm197_vm10 = vcmp.gt.f32.partialorder %v161_v63, 0.0  ;;  %v232_v9 = vmul.f32 0.01, %v160_v62  ;;  %v233_v10 = vmul.f32 0.01, %v161_v63  ;;  %677 = vmatpush3.bf16.msra.mxu0 %v303_v3 }
  0x14   :  { %v145_v11 = vadd.f32 %v822_v8, %v102_v4  ;;  %vm180_vm11 = vcmp.gt.f32.partialorder %v144_v5, 0.0  ;;  %v216_v12 = vmul.f32 0.01, %v144_v5  ;;  %v162_v16 = vadd.f32 %v822_v8, %v119_v6 }
  0x15   :  { %v268_v14 = vsel %vm196_vm9, %v160_v62, %v232_v9  ;;  %v269_v15 = vsel %vm197_vm10, %v161_v63, %v233_v10  ;;  %v163_v22 = vadd.f32 %v822_v8, %v120_v13  ;;  %v600_v24 = vunpack.c.h.bf16 %v659_v7  ;;  %v670_v63 = vld [vmem:[%s1022_s0 + $0x70] sm:$0xff]  }
  0x16   :  { %v312_v19 = vpack.c.bf16 %v269_v15, %v268_v14  ;;  %vm181_vm12 = vcmp.gt.f32.partialorder %v145_v11, 0.0  ;;  %v217_v20 = vmul.f32 0.01, %v145_v11  ;;  %v252_v21 = vsel %vm180_vm11, %v144_v5, %v216_v12  ;;  %v662_v13 = vld [vmem:[%s1022_s0 + $0x30] sm:$0xff]  }
  0x17   :  { %vm198_vm13 = vcmp.gt.f32.partialorder %v162_v16, 0.0  ;;  %v234_v23 = vmul.f32 0.01, %v162_v16  ;;  %v103_v26 = vmul.f32 %v599_v17, %v805_v1  ;;  %v635_v27 = vunpack.c.l.bf16 %v668_v18 }
  0x18   :  { %678 = vmatprep.subr.bf16.mxu0 %v312_v19  ;;  %v253_v25 = vsel %vm181_vm12, %v145_v11, %v217_v20  ;;  %v636_v28 = vunpack.c.h.bf16 %v668_v18  ;;  %vm199_vm14 = vcmp.gt.f32.partialorder %v163_v22, 0.0  ;;  %v235_v32 = vmul.f32 0.01, %v163_v22 }
  0x19   :  { %v304_v31 = vpack.c.bf16 %v253_v25, %v252_v21  ;;  %v270_v33 = vsel %vm198_vm13, %v162_v16, %v234_v23  ;;  %v104_v34 = vmul.f32 %v600_v24, %v805_v1  ;;  %v146_v35 = vadd.f32 %v822_v8, %v103_v26 }
  0x1a   :  { %v121_v36 = vmul.f32 %v635_v27, %v805_v1  ;;  %v122_v37 = vmul.f32 %v636_v28, %v805_v1  ;;  %v271_v38 = vsel %vm199_vm14, %v163_v22, %v235_v32  ;;  %v603_v39 = vunpack.c.l.bf16 %v660_v29  ;;  %v672_v32 = vld [vmem:[%s1022_s0 + $0x80] sm:$0xff]  }
  0x1b   :  { %679 = vmatpush3.bf16.msra.mxu0 %v304_v31  ;;  %v604_v40 = vunpack.c.h.bf16 %v660_v29  ;;  %v639_v41 = vunpack.c.l.bf16 %v669_v30  ;;  %v313_v42 = vpack.c.bf16 %v271_v38, %v270_v33  ;;  %v147_v43 = vadd.f32 %v822_v8, %v104_v34 }
  0x1c   :  { %vm182_vm15 = vcmp.gt.f32.partialorder %v146_v35, 0.0  ;;  %v218_v44 = vmul.f32 0.01, %v146_v35  ;;  %v164_v45 = vadd.f32 %v822_v8, %v121_v36  ;;  %v165_v46 = vadd.f32 %v822_v8, %v122_v37 }
  0x1d   :  { %v105_v47 = vmul.f32 %v603_v39, %v805_v1  ;;  %v106_v48 = vmul.f32 %v604_v40, %v805_v1  ;;  %680 = vmatprep.subr.bf16.mxu0 %v313_v42  ;;  %vm183_vm1 = vcmp.gt.f32.partialorder %v147_v43, 0.0  ;;  %v219_v49 = vmul.f32 0.01, %v147_v43 }
  0x1e   :  { %v254_v50 = vsel %vm182_vm15, %v146_v35, %v218_v44  ;;  %v640_v51 = vunpack.c.h.bf16 %v669_v30  ;;  %vm200_vm2 = vcmp.gt.f32.partialorder %v164_v45, 0.0  ;;  %vm201_vm3 = vcmp.gt.f32.partialorder %v165_v46, 0.0 }
  0x1f   :  { %v236_v52 = vmul.f32 0.01, %v164_v45  ;;  %v237_v53 = vmul.f32 0.01, %v165_v46  ;;  %v255_v54 = vsel %vm183_vm1, %v147_v43, %v219_v49  ;;  %v148_v55 = vadd.f32 %v822_v8, %v105_v47 }
  0x20   :  { %v149_v56 = vadd.f32 %v822_v8, %v106_v48  ;;  %v123_v57 = vmul.f32 %v639_v41, %v805_v1  ;;  %v305_v59 = vpack.c.bf16 %v255_v54, %v254_v50  ;;  %v124_v62 = vmul.f32 %v640_v51, %v805_v1  ;;  %v671_v41 = vld [vmem:[%s1022_s0 + $0x78] sm:$0xff]   ;;  %v673_v54 = vld [vmem:[%s1022_s0 + $0x88] sm:$0xff]  }
  0x21   :  { %v272_v60 = vsel %vm200_vm2, %v164_v45, %v236_v52  ;;  %v273_v61 = vsel %vm201_vm3, %v165_v46, %v237_v53  ;;  %vm184_vm4 = vcmp.gt.f32.partialorder %v148_v55, 0.0  ;;  %v220_v3 = vmul.f32 0.01, %v148_v55  ;;  %v663_v46 = vld [vmem:[%s1022_s0 + $0x38] sm:$0xff]  }
  0x22   :  { %v314_v0 = vpack.c.bf16 %v273_v61, %v272_v60  ;;  %vm185_vm5 = vcmp.gt.f32.partialorder %v149_v56, 0.0  ;;  %681 = vmatpush3.bf16.msra.mxu0 %v305_v59  ;;  %v221_v4 = vmul.f32 0.01, %v149_v56  ;;  %v166_v5 = vadd.f32 %v822_v8, %v123_v57 }
  0x23   :  { %v167_v6 = vadd.f32 %v822_v8, %v124_v62  ;;  %v607_v7 = vunpack.c.l.bf16 %v661_v58  ;;  %v256_v9 = vsel %vm184_vm4, %v148_v55, %v220_v3  ;;  %v608_v10 = vunpack.c.h.bf16 %v661_v58 }
  0x24   :  { %682 = vmatprep.subr.bf16.mxu0 %v314_v0  ;;  %v643_v11 = vunpack.c.l.bf16 %v670_v63  ;;  %v644_v12 = vunpack.c.h.bf16 %v670_v63  ;;  %v257_v14 = vsel %vm185_vm5, %v149_v56, %v221_v4  ;;  %vm202_vm6 = vcmp.gt.f32.partialorder %v166_v5, 0.0 }
  0x25   :  { %vm203_vm7 = vcmp.gt.f32.partialorder %v167_v6, 0.0  ;;  %v238_v15 = vmul.f32 0.01, %v166_v5  ;;  %v306_v16 = vpack.c.bf16 %v257_v14, %v256_v9  ;;  %v239_v17 = vmul.f32 0.01, %v167_v6 }
  0x26   :  { %v107_v18 = vmul.f32 %v607_v7, %v805_v1  ;;  %v108_v19 = vmul.f32 %v608_v10, %v805_v1  ;;  %v125_v21 = vmul.f32 %v643_v11, %v805_v1  ;;  %v126_v22 = vmul.f32 %v644_v12, %v805_v1 }
  0x27   :  { %v274_v20 = vsel %vm202_vm6, %v166_v5, %v238_v15  ;;  %v611_v23 = vunpack.c.l.bf16 %v662_v13  ;;  %683 = vmatpush3.bf16.msra.mxu0 %v306_v16  ;;  %v275_v24 = vsel %vm203_vm7, %v167_v6, %v239_v17  ;;  %v612_v27 = vunpack.c.h.bf16 %v662_v13 }
  0x28   :  { %v150_v25 = vadd.f32 %v822_v8, %v107_v18  ;;  %v151_v26 = vadd.f32 %v822_v8, %v108_v19  ;;  %v315_v28 = vpack.c.bf16 %v275_v24, %v274_v20  ;;  %v168_v29 = vadd.f32 %v822_v8, %v125_v21 }
  0x29   :  { %v169_v30 = vadd.f32 %v822_v8, %v126_v22  ;;  %v109_v31 = vmul.f32 %v611_v23, %v805_v1  ;;  %v110_v39 = vmul.f32 %v612_v27, %v805_v1  ;;  %v651_v45 = vunpack.c.l.bf16 %v672_v32 }
  0x2a   :  { %vm186_vm8 = vcmp.gt.f32.partialorder %v150_v25, 0.0  ;;  %vm187_vm9 = vcmp.gt.f32.partialorder %v151_v26, 0.0  ;;  %v222_v33 = vmul.f32 0.01, %v150_v25  ;;  %v223_v34 = vmul.f32 0.01, %v151_v26  ;;  %684 = vmatprep.subr.bf16.mxu0 %v315_v28 }
  0x2b   :  { %vm204_vm10 = vcmp.gt.f32.partialorder %v168_v29, 0.0  ;;  %vm205_vm11 = vcmp.gt.f32.partialorder %v169_v30, 0.0  ;;  %v240_v35 = vmul.f32 0.01, %v168_v29  ;;  %v241_v36 = vmul.f32 0.01, %v169_v30 }
  0x2c   :  { %v258_v37 = vsel %vm186_vm8, %v150_v25, %v222_v33  ;;  %v259_v38 = vsel %vm187_vm9, %v151_v26, %v223_v34  ;;  %v152_v40 = vadd.f32 %v822_v8, %v109_v31  ;;  %v153_v48 = vadd.f32 %v822_v8, %v110_v39  ;;  %v753_v33 = vld [vmem:[%s1025_s3] ss:$12 sps:$4 sm:$0xff]  }
  0x2d   :  { %v307_v42 = vpack.c.bf16 %v259_v38, %v258_v37  ;;  %v276_v43 = vsel %vm204_vm10, %v168_v29, %v240_v35  ;;  %v277_v44 = vsel %vm205_vm11, %v169_v30, %v241_v36  ;;  %v652_v50 = vunpack.c.h.bf16 %v672_v32  ;;  %v759_v38 = vld [vmem:[%s1025_s3 + $0x18] ss:$12 sps:$4 sm:$0xff]   ;;  %v761_v39 = vld [vmem:[%s1025_s3 + $0x34] ss:$12 sps:$4 sm:$0xff]  }
  0x2e   :  { %v316_v47 = vpack.c.bf16 %v277_v44, %v276_v43  ;;  %vm188_vm12 = vcmp.gt.f32.partialorder %v152_v40, 0.0  ;;  %v224_v49 = vmul.f32 0.01, %v152_v40  ;;  %v129_v51 = vmul.f32 %v651_v45, %v805_v1  ;;  %v764_v43 = vld [vmem:[%s1025_s3 + $0x38] ss:$12 sps:$4 sm:$0xff]  }
  0x2f   :  { %685 = vmatpush3.bf16.msra.mxu0 %v307_v42  ;;  %v647_v52 = vunpack.c.l.bf16 %v671_v41  ;;  %v648_v53 = vunpack.c.h.bf16 %v671_v41  ;;  %vm189_vm13 = vcmp.gt.f32.partialorder %v153_v48, 0.0  ;;  %v225_v55 = vmul.f32 0.01, %v153_v48  ;;  %v763_v41 = vld [vmem:[%s1025_s3 + $0x30] ss:$12 sps:$4 sm:$0xff]   ;;  %v300_v44 = vld [vmem:[%s1025_s3 + $0x60] sm:$0xff] }
  0x30   :  { %686 = vmatprep.subr.bf16.mxu0 %v316_v47  ;;  %v260_v56 = vsel %vm188_vm12, %v152_v40, %v224_v49  ;;  %v615_v57 = vunpack.c.l.bf16 %v663_v46  ;;  %v130_v58 = vmul.f32 %v652_v50, %v805_v1  ;;  %v172_v59 = vadd.f32 %v822_v8, %v129_v51  ;;  %v760_v40 = vld [vmem:[%s1025_s3 + $0x20] ss:$12 sps:$4 sm:$0xff]   ;;  %v767_v45 = vld [vmem:[%s1025_s3 + $0x48] ss:$12 sps:$4 sm:$0xff]   ;;  %v768_v47 = vld [vmem:[%s1025_s3 + $0x50] ss:$12 sps:$4 sm:$0xff]  }
  0x31   :  { %v127_v60 = vmul.f32 %v647_v52, %v805_v1  ;;  %v128_v61 = vmul.f32 %v648_v53, %v805_v1  ;;  %v261_v62 = vsel %vm189_vm13, %v153_v48, %v225_v55  ;;  %v616_v63 = vunpack.c.h.bf16 %v663_v46  ;;  %v765_v42 = vld [vmem:[%s1025_s3 + $0x4c] ss:$12 sps:$4 sm:$0xff]   ;;  %v771_v49 = vld [vmem:[%s1025_s3 + $0x68] ss:$0 sps:$4 sm:$0xff]  }
  0x32   :  { %v111_v0 = vmul.f32 %v615_v57, %v805_v1  ;;  %v655_v3 = vunpack.c.l.bf16 %v673_v54  ;;  %v308_v4 = vpack.c.bf16 %v261_v62, %v260_v56  ;;  %v173_v5 = vadd.f32 %v822_v8, %v130_v58 }
  0x33   :  { %vm208_vm14 = vcmp.gt.f32.partialorder %v172_v59, 0.0  ;;  %v244_v6 = vmul.f32 0.01, %v172_v59  ;;  %v170_v7 = vadd.f32 %v822_v8, %v127_v60  ;;  %v171_v9 = vadd.f32 %v822_v8, %v128_v61 }
  0x34   :  { %v112_v10 = vmul.f32 %v616_v63, %v805_v1  ;;  %v154_v11 = vadd.f32 %v822_v8, %v111_v0  ;;  %687 = vmatpush3.bf16.msra.mxu0 %v308_v4  ;;  %vm209_vm15 = vcmp.gt.f32.partialorder %v173_v5, 0.0  ;;  %v245_v12 = vmul.f32 0.01, %v173_v5 }
  0x35   :  { %v280_v13 = vsel %vm208_vm14, %v172_v59, %v244_v6  ;;  %v656_v14 = vunpack.c.h.bf16 %v673_v54  ;;  %vm206_vm1 = vcmp.gt.f32.partialorder %v170_v7, 0.0  ;;  %vm207_vm2 = vcmp.gt.f32.partialorder %v171_v9, 0.0 }
  0x36   :  { %v242_v15 = vmul.f32 0.01, %v170_v7  ;;  %v243_v16 = vmul.f32 0.01, %v171_v9  ;;  %v281_v17 = vsel %vm209_vm15, %v173_v5, %v245_v12  ;;  %v155_v18 = vadd.f32 %v822_v8, %v112_v10 }
  0x37   :  { %vm190_vm3 = vcmp.gt.f32.partialorder %v154_v11, 0.0  ;;  %v226_v19 = vmul.f32 0.01, %v154_v11  ;;  %v318_v20 = vpack.c.bf16 %v281_v17, %v280_v13  ;;  %v131_v23 = vmul.f32 %v655_v3, %v805_v1 }
  0x38   :  { %v278_v21 = vsel %vm206_vm1, %v170_v7, %v242_v15  ;;  %v279_v22 = vsel %vm207_vm2, %v171_v9, %v243_v16  ;;  %vm191_vm4 = vcmp.gt.f32.partialorder %v155_v18, 0.0  ;;  %v227_v25 = vmul.f32 0.01, %v155_v18 }
  0x39   :  { %v317_v24 = vpack.c.bf16 %v279_v22, %v278_v21  ;;  %v262_v26 = vsel %vm190_vm3, %v154_v11, %v226_v19  ;;  %728 = vmatpush3.bf16.msra.mxu1 %v318_v20  ;;  %v132_v27 = vmul.f32 %v656_v14, %v805_v1  ;;  %v174_v28 = vadd.f32 %v822_v8, %v131_v23  ;;  %v757_v1 = vld [vmem:[%s1025_s3 + $0x1c] ss:$12 sps:$4 sm:$0xff]  }
  0x3a   :  { %729 = vmatprep.subr.bf16.mxu1 %v772_v2  ;;  %v263_v29 = vsel %vm191_vm4, %v155_v18, %v227_v25  ;;  %vm390_vm7 = vcmask 261120   ;;  %v578_v46 = vcombine.high %v300_v44, %v300_v44  ;;  %v577_v48 = vcombine.low %v300_v44, %v300_v44 }
  0x3b   :  { %688 = vmatprep.subr.bf16.mxu0 %v317_v24  ;;  %v309_v30 = vpack.c.bf16 %v263_v29, %v262_v26  ;;  %v175_v31 = vadd.f32 %v822_v8, %v132_v27  ;;  %vm210_vm5 = vcmp.gt.f32.partialorder %v174_v28, 0.0  ;;  %v246_v32 = vmul.f32 0.01, %v174_v28  ;;  %v756_v8 = vld [vmem:[%s1025_s3 + $0x8] ss:$12 sps:$4 sm:$0xff]  }
  0x3d   :  { %689 = vmatpush3.bf16.msra.mxu0 %v309_v30  ;;  %vm211_vm6 = vcmp.gt.f32.partialorder %v175_v31, 0.0  ;;  %v247_v34 = vmul.f32 0.01, %v175_v31  ;;  %v282_v35 = vsel %vm210_vm5, %v174_v28, %v246_v32 }
  0x3f   :  { %v283_v36 = vsel %vm211_vm6, %v175_v31, %v247_v34 }
  0x40   :  { %v319_v37 = vpack.c.bf16 %v283_v36, %v282_v35  ;;  %439 = vmatmul.mubr.bf16.vlgmr.msra.gmra.mrb[0].mxu0 %v753_v33 }
  0x41   :  { %446 = vmatprep.mubr.bf16.mxu0 %v757_v1 }
  0x42   :  { %730 = vmatpush3.bf16.msra.mxu1 %v319_v37 }
  0x45   :  { %732 = vmatmul.mubr.msk.bf16.vlgmr.msra.gmra.mrb[0].mxu1 %vm390_vm7, %v756_v8 }
  0x46   :  { %735 = vmatprep.mubr.msk.bf16.mxu1 %vm773_vm0, %v772_v2 }
  0x48   :  { %447 = vmatmul.mubr.bf16.gmra.mrb[4].mxu0 %v759_v38 }
  0x49   :  { %454 = vmatprep.mubr.bf16.mxu0 %v761_v39 }
  0x4d   :  { %736 = vmatmul.mubr.msk.bf16.gmra.mrb[4].mxu1 %vm390_vm7, %v760_v40 }
  0x4e   :  { %739 = vmatprep.mubr.msk.bf16.mxu1 %vm773_vm0, %v772_v2 }
  0x50   :  { %455 = vmatmul.mubr.bf16.gmra.mrb[8].mxu0 %v763_v41 }
  0x51   :  { %462 = vmatprep.mubr.bf16.mxu0 %v765_v42 }
  0x55   :  { %740 = vmatmul.mubr.msk.bf16.gmra.mrb[8].mxu1 %vm390_vm7, %v764_v43 }
  0x56   :  { %743 = vmatprep.mubr.msk.bf16.mxu1 %vm773_vm0, %v772_v2 }
  0x58   :  { %463 = vmatmul.mubr.bf16.gmra.mrb[12].mxu0 %v767_v45 }
  0x59   :  { %470 = vmatprep.mubr.bf16.mxu0 %v578_v46 }
  0x5d   :  { %744 = vmatmul.mubr.msk.bf16.gmra.mrb[12].mxu1 %vm390_vm7, %v768_v47 }
  0x5e   :  { %747 = vmatprep.mubr.msk.bf16.mxu1 %vm773_vm0, %v772_v2 }
  0x60   :  { %471 = vmatmul.mubr.bf16.gmra.mrb[16].mxu0 %v577_v48 }
  0x65   :  { %748 = vmatmul.mubr.msk.bf16.gmra.mrb[16].mxu1 %vm390_vm7, %v771_v49 }
 0x113   :  { %v690_v50 = vpop.f32.mrb[0].mxu0 }
 0x114   :  { %v691_v51 = vpop.f32.mrb[1].mxu0 }
 0x115   :  { %v692_v52 = vadd.f32 %v691_v51, %v690_v50  ;;  %v693_v53 = vpop.f32.mrb[2].mxu0 }
 0x116   :  { %v694_v54 = vpop.f32.mrb[3].mxu0 }
 0x117   :  { %v695_v55 = vadd.f32 %v694_v54, %v693_v53 }
 0x118   :  { %v512_v56 = vpop.f32.mrb[0].mxu1 }
 0x119   :  { %v513_v57 = vadd.f32 %v692_v52, %v512_v56  ;;  %v733_v58 = vpop.f32.mrb[1].mxu1 }
 0x11a   :  { %v515_v59 = vpop.f32.mrb[2].mxu1 }
 0x11b   :  { %550 = vst [vmem:[%s1026_s4] sm:$0xff] %v513_v57  ;;  %v516_v2 = vadd.f32 %v695_v55, %v515_v59  ;;  %v734_v60 = vpop.f32.mrb[3].mxu1  ;;  %v696_v61 = vpop.f32.mrb[4].mxu0 }
 0x11c   :  { %v697_v62 = vpop.f32.mrb[5].mxu0 }
 0x11d   :  { %551 = vst [vmem:[%s1026_s4 + $0x8] sm:$0xff] %v516_v2  ;;  %v698_v63 = vadd.f32 %v697_v62, %v696_v61  ;;  %v699_v0 = vpop.f32.mrb[6].mxu0 }
 0x11e   :  { %v700_v3 = vpop.f32.mrb[7].mxu0 }
 0x11f   :  { %v701_v4 = vadd.f32 %v700_v3, %v699_v0 }
 0x120   :  { %v520_v5 = vpop.f32.mrb[4].mxu1 }
 0x121   :  { %v521_v6 = vadd.f32 %v698_v63, %v520_v5  ;;  %v737_v7 = vpop.f32.mrb[5].mxu1 }
 0x122   :  { %v523_v9 = vpop.f32.mrb[6].mxu1 }
 0x123   :  { %552 = vst [vmem:[%s1026_s4 + $0x10] sm:$0xff] %v521_v6  ;;  %v524_v10 = vadd.f32 %v701_v4, %v523_v9  ;;  %v738_v11 = vpop.f32.mrb[7].mxu1  ;;  %v702_v12 = vpop.f32.mrb[8].mxu0 }
 0x124   :  { %v703_v13 = vpop.f32.mrb[9].mxu0 }
 0x125   :  { %553 = vst [vmem:[%s1026_s4 + $0x18] sm:$0xff] %v524_v10  ;;  %v704_v14 = vadd.f32 %v703_v13, %v702_v12  ;;  %v705_v15 = vpop.f32.mrb[10].mxu0 }
 0x126   :  { %v706_v16 = vpop.f32.mrb[11].mxu0 }
 0x127   :  { %v707_v17 = vadd.f32 %v706_v16, %v705_v15 }
 0x128   :  { %v528_v18 = vpop.f32.mrb[8].mxu1 }
 0x129   :  { %v529_v19 = vadd.f32 %v704_v14, %v528_v18  ;;  %v741_v20 = vpop.f32.mrb[9].mxu1 }
 0x12a   :  { %v531_v21 = vpop.f32.mrb[10].mxu1 }
 0x12b   :  { %554 = vst [vmem:[%s1026_s4 + $0x20] sm:$0xff] %v529_v19  ;;  %v532_v22 = vadd.f32 %v707_v17, %v531_v21  ;;  %v742_v23 = vpop.f32.mrb[11].mxu1  ;;  %v708_v24 = vpop.f32.mrb[12].mxu0 }
 0x12c   :  { %v709_v25 = vpop.f32.mrb[13].mxu0 }
 0x12d   :  { %555 = vst [vmem:[%s1026_s4 + $0x28] sm:$0xff] %v532_v22  ;;  %v710_v26 = vadd.f32 %v709_v25, %v708_v24  ;;  %v711_v27 = vpop.f32.mrb[14].mxu0 }
 0x12e   :  { %v712_v28 = vpop.f32.mrb[15].mxu0 }
 0x12f   :  { %v713_v29 = vadd.f32 %v712_v28, %v711_v27 }
 0x130   :  { %v536_v30 = vpop.f32.mrb[12].mxu1 }
 0x131   :  { %v537_v31 = vadd.f32 %v710_v26, %v536_v30  ;;  %v745_v32 = vpop.f32.mrb[13].mxu1 }
 0x132   :  { %v539_v33 = vpop.f32.mrb[14].mxu1 }
 0x133   :  { %556 = vst [vmem:[%s1026_s4 + $0x30] sm:$0xff] %v537_v31  ;;  %v540_v34 = vadd.f32 %v713_v29, %v539_v33  ;;  %v746_v35 = vpop.f32.mrb[15].mxu1  ;;  %v714_v1 = vpop.f32.mrb[16].mxu0 }
 0x134   :  { %v715_v36 = vpop.f32.mrb[17].mxu0 }
 0x135   :  { %557 = vst [vmem:[%s1026_s4 + $0x38] sm:$0xff] %v540_v34  ;;  %v716_v37 = vadd.f32 %v715_v36, %v714_v1  ;;  %v717_v8 = vpop.f32.mrb[18].mxu0 }
 0x136   :  { %v718_v38 = vpop.f32.mrb[19].mxu0 }
 0x138   :  { %v544_v39 = vpop.f32.mrb[16].mxu1 }
 0x139   :  { %v545_v40 = vadd.f32 %v716_v37, %v544_v39  ;;  %v749_v41 = vpop.f32.mrb[17].mxu1 }
 0x13a   :  { %v547_v42 = vpop.f32.mrb[18].mxu1 }
 0x13b   :  { %558 = vst [vmem:[%s1026_s4 + $0x40] sm:$0xff] %v545_v40  ;;  %v750_v43 = vpop.f32.mrb[19].mxu1 }

// kernel: conv_block_forward.6
= control target key start
LH: loop header
LB: loop body
LE: loop exit
PB: predicated region body
PF: predicated region fallthrough
CT: control target
= control target key end

     0   :  { %v1112_v26 = vmov 0.0   ;;  %s1384_s1 = inlined_call_operand.vmem [shape: bf16[128,128], index: 1, kind: input, shape index: {}]   ;;  %s1385_s0 = inlined_call_operand.vmem [shape: bf16[288,128], index: 0, kind: input, shape index: {}]   ;;  %s1386_s3 = inlined_call_operand.vmem [shape: f32[1,1,128], index: 3, kind: output, shape index: {1}]   ;;  %s1387_s4 = inlined_call_operand.vmem [shape: f32[1,1,128], index: 4, kind: output, shape index: {2}]   ;;  %s1388_s2 = inlined_call_operand.vmem [shape: bf16[288,128], index: 2, kind: output, shape index: {0}]  }
   0x1   :  { %v1086_v0 = vld [vmem:[%s1384_s1] sm:$0xff]   ;;  %v1087_v1 = vld [vmem:[%s1384_s1 + $0x8] sm:$0xff]   ;;  %v1088_v2 = vld [vmem:[%s1384_s1 + $0x10] sm:$0xff]   ;;  %55 = vst [vmem:[%s1386_s3] sm:$0x1] %v1112_v26 }
   0x2   :  { %1017 = vmatprep.subr.bf16.mxu0 %v1086_v0  ;;  %1069 = vmatprep.subr.bf16.mxu1 %v1086_v0  ;;  %v1089_v3 = vld [vmem:[%s1384_s1 + $0x18] sm:$0xff]   ;;  %v1094_v4 = vld [vmem:[%s1385_s0] sm:$0xff]   ;;  %v1091_v6 = vld [vmem:[%s1384_s1 + $0x28] sm:$0xff]   ;;  %56 = vst [vmem:[%s1387_s4] sm:$0x1] %v1112_v26 }
   0x3   :  { %1018 = vmatpush3.bf16.msra.mxu0 %v1086_v0  ;;  %1077 = vmatpush3.bf16.msra.mxu1 %v1086_v0  ;;  %v1090_v5 = vld [vmem:[%s1384_s1 + $0x20] sm:$0xff]   ;;  %v1104_v7 = vld [vmem:[%s1385_s0 + $0x50] sm:$0xff]   ;;  %v1093_v9 = vld [vmem:[%s1384_s1 + $0x38] sm:$0xff]  }
   0x4   :  { %1019 = vmatprep.subr.bf16.mxu0 %v1087_v1  ;;  %1070 = vmatprep.subr.bf16.mxu1 %v1087_v1  ;;  %v1092_v8 = vld [vmem:[%s1384_s1 + $0x30] sm:$0xff]   ;;  %v1095_v10 = vld [vmem:[%s1385_s0 + $0x8] sm:$0xff]   ;;  %v1105_v11 = vld [vmem:[%s1385_s0 + $0x58] sm:$0xff]  }
   0x5   :  { %1033 = vmatprep.mubr.bf16.mxu0 %v1094_v4  ;;  %1053 = vmatprep.mubr.bf16.mxu1 %v1104_v7  ;;  %v1096_v12 = vld [vmem:[%s1385_s0 + $0x10] sm:$0xff]   ;;  %v1106_v13 = vld [vmem:[%s1385_s0 + $0x60] sm:$0xff]   ;;  %v1097_v14 = vld [vmem:[%s1385_s0 + $0x18] sm:$0xff]  }
   0x6   :  { %v1107_v15 = vld [vmem:[%s1385_s0 + $0x68] sm:$0xff]   ;;  %v1098_v16 = vld [vmem:[%s1385_s0 + $0x20] sm:$0xff]   ;;  %v1108_v17 = vld [vmem:[%s1385_s0 + $0x70] sm:$0xff]  }
   0x7   :  { %1020 = vmatpush3.bf16.msra.mxu0 %v1087_v1  ;;  %1078 = vmatpush3.bf16.msra.mxu1 %v1087_v1  ;;  %v1099_v18 = vld [vmem:[%s1385_s0 + $0x28] sm:$0xff]   ;;  %v1109_v19 = vld [vmem:[%s1385_s0 + $0x78] sm:$0xff]   ;;  %v1100_v20 = vld [vmem:[%s1385_s0 + $0x30] sm:$0xff]  }
   0x8   :  { %1021 = vmatprep.subr.bf16.mxu0 %v1088_v2  ;;  %1071 = vmatprep.subr.bf16.mxu1 %v1088_v2  ;;  %v1110_v21 = vld [vmem:[%s1385_s0 + $0x80] sm:$0xff]   ;;  %v1101_v22 = vld [vmem:[%s1385_s0 + $0x38] sm:$0xff]   ;;  %v1111_v23 = vld [vmem:[%s1385_s0 + $0x88] sm:$0xff]  }
   0x9   :  { %v1102_v24 = vld [vmem:[%s1385_s0 + $0x40] sm:$0xff]   ;;  %v1103_v25 = vld [vmem:[%s1385_s0 + $0x48] sm:$0xff]  }
   0xb   :  { %1022 = vmatpush3.bf16.msra.mxu0 %v1088_v2  ;;  %1079 = vmatpush3.bf16.msra.mxu1 %v1088_v2 }
   0xc   :  { %1023 = vmatprep.subr.bf16.mxu0 %v1089_v3  ;;  %1072 = vmatprep.subr.bf16.mxu1 %v1089_v3 }
   0xf   :  { %1024 = vmatpush3.bf16.msra.mxu0 %v1089_v3  ;;  %1080 = vmatpush3.bf16.msra.mxu1 %v1089_v3 }
  0x10   :  { %1025 = vmatprep.subr.bf16.mxu0 %v1090_v5  ;;  %1073 = vmatprep.subr.bf16.mxu1 %v1090_v5 }
  0x13   :  { %1026 = vmatpush3.bf16.msra.mxu0 %v1090_v5  ;;  %1081 = vmatpush3.bf16.msra.mxu1 %v1090_v5 }
  0x14   :  { %1027 = vmatprep.subr.bf16.mxu0 %v1091_v6  ;;  %1074 = vmatprep.subr.bf16.mxu1 %v1091_v6 }
  0x17   :  { %1028 = vmatpush3.bf16.msra.mxu0 %v1091_v6  ;;  %1082 = vmatpush3.bf16.msra.mxu1 %v1091_v6 }
  0x18   :  { %1029 = vmatprep.subr.bf16.mxu0 %v1092_v8  ;;  %1075 = vmatprep.subr.bf16.mxu1 %v1092_v8 }
  0x1b   :  { %1030 = vmatpush3.bf16.msra.mxu0 %v1092_v8  ;;  %1083 = vmatpush3.bf16.msra.mxu1 %v1092_v8 }
  0x1c   :  { %1031 = vmatprep.subr.bf16.mxu0 %v1093_v9  ;;  %1076 = vmatprep.subr.bf16.mxu1 %v1093_v9 }
  0x1f   :  { %1032 = vmatpush3.bf16.msra.mxu0 %v1093_v9  ;;  %1084 = vmatpush3.bf16.msra.mxu1 %v1093_v9 }
  0x22   :  { %1034 = vmatmul.mubr.bf16.vlgmr.msra.gmra.mrb[0].mxu0 %v1095_v10  ;;  %1054 = vmatmul.mubr.bf16.vlgmr.msra.gmra.mrb[0].mxu1 %v1105_v11 }
  0x23   :  { %1037 = vmatprep.mubr.bf16.mxu0 %v1096_v12  ;;  %1057 = vmatprep.mubr.bf16.mxu1 %v1106_v13 }
  0x2a   :  { %1038 = vmatmul.mubr.bf16.gmra.mrb[4].mxu0 %v1097_v14  ;;  %1058 = vmatmul.mubr.bf16.gmra.mrb[4].mxu1 %v1107_v15 }
  0x2b   :  { %1041 = vmatprep.mubr.bf16.mxu0 %v1098_v16  ;;  %1061 = vmatprep.mubr.bf16.mxu1 %v1108_v17 }
  0x32   :  { %1042 = vmatmul.mubr.bf16.gmra.mrb[8].mxu0 %v1099_v18  ;;  %1062 = vmatmul.mubr.bf16.gmra.mrb[8].mxu1 %v1109_v19 }
  0x33   :  { %1045 = vmatprep.mubr.bf16.mxu0 %v1100_v20  ;;  %1065 = vmatprep.mubr.bf16.mxu1 %v1110_v21 }
  0x3a   :  { %1046 = vmatmul.mubr.bf16.gmra.mrb[12].mxu0 %v1101_v22  ;;  %1066 = vmatmul.mubr.bf16.gmra.mrb[12].mxu1 %v1111_v23 }
  0x3b   :  { %1049 = vmatprep.mubr.bf16.mxu0 %v1102_v24 }
  0x42   :  { %1050 = vmatmul.mubr.bf16.gmra.mrb[16].mxu0 %v1103_v25 }
  0xf5   :  { %v1035_v27 = vpop.f32.mrb[0].mxu0  ;;  %v1222_v28 = vpop.f32.mrb[0].mxu1 }
  0xf6   :  { %v299_v29 = vpop.f32.mrb[1].mxu0  ;;  %v1224_v30 = vpop.f32.mrb[1].mxu1  ;;  %v669_v42 = vmul.f32 %v1035_v27, %v1035_v27 }
  0xf7   :  { %v1036_v31 = vpop.f32.mrb[2].mxu0  ;;  %v1226_v32 = vpop.f32.mrb[2].mxu1  ;;  %v667_v33 = vmul.f32 %v299_v29, %v299_v29 }
  0xf8   :  { %v892_v34 = vpack.c.bf16 %v1036_v31, %v1035_v27  ;;  %v302_v35 = vpop.f32.mrb[3].mxu0  ;;  %v942_v36 = vpack.c.bf16 %v1226_v32, %v1222_v28  ;;  %v1230_v37 = vpop.f32.mrb[3].mxu1  ;;  %v670_v45 = vmul.f32 %v1036_v31, %v1036_v31 }
  0xf9   :  { %v887_v38 = vpack.c.bf16 %v302_v35, %v299_v29  ;;  %v623_v39 = vadd.f32 %v302_v35, %v299_v29  ;;  %v668_v40 = vmul.f32 %v302_v35, %v302_v35  ;;  %v937_v41 = vpack.c.bf16 %v1230_v37, %v1224_v30 }
  0xfa   :  { %974 = vst [vmem:[%s1388_s2 + $0x8] sm:$0xff] %v892_v34   ;;  %984 = vst [vmem:[%s1388_s2 + $0x58] sm:$0xff] %v942_v36  }
  0xfb   :  { %888 = vst [vmem:[%s1388_s2] sm:$0xff] %v887_v38   ;;  %v624_v43 = vadd.f32 %v1035_v27, %v623_v39  ;;  %v703_v44 = vadd.f32 %v668_v40, %v667_v33  ;;  %983 = vst [vmem:[%s1388_s2 + $0x50] sm:$0xff] %v937_v41  }
  0xfd   :  { %v704_v46 = vadd.f32 %v703_v44, %v669_v42  ;;  %v1039_v47 = vpop.f32.mrb[4].mxu0  ;;  %v625_v48 = vadd.f32 %v1036_v31, %v624_v43  ;;  %v1246_v49 = vpop.f32.mrb[4].mxu1 }
  0xfe   :  { %v315_v50 = vpop.f32.mrb[5].mxu0  ;;  %v1248_v51 = vpop.f32.mrb[5].mxu1  ;;  %v673_v2 = vmul.f32 %v1039_v47, %v1039_v47 }
  0xff   :  { %v626_v52 = vadd.f32 %v625_v48, %v315_v50  ;;  %v671_v53 = vmul.f32 %v315_v50, %v315_v50  ;;  %v705_v54 = vadd.f32 %v704_v46, %v670_v45  ;;  %v1040_v55 = vpop.f32.mrb[6].mxu0  ;;  %v1250_v56 = vpop.f32.mrb[6].mxu1 }
 0x100   :  { %v902_v57 = vpack.c.bf16 %v1040_v55, %v1039_v47  ;;  %v318_v58 = vpop.f32.mrb[7].mxu0  ;;  %v952_v59 = vpack.c.bf16 %v1250_v56, %v1246_v49  ;;  %v1254_v60 = vpop.f32.mrb[7].mxu1  ;;  %v674_v5 = vmul.f32 %v1040_v55, %v1040_v55 }
 0x101   :  { %v706_v61 = vadd.f32 %v705_v54, %v671_v53  ;;  %v897_v62 = vpack.c.bf16 %v318_v58, %v315_v50  ;;  %v627_v63 = vadd.f32 %v626_v52, %v318_v58  ;;  %v672_v0 = vmul.f32 %v318_v58, %v318_v58 }
 0x102   :  { %976 = vst [vmem:[%s1388_s2 + $0x18] sm:$0xff] %v902_v57   ;;  %986 = vst [vmem:[%s1388_s2 + $0x68] sm:$0xff] %v952_v59   ;;  %v947_v1 = vpack.c.bf16 %v1254_v60, %v1248_v51 }
 0x103   :  { %975 = vst [vmem:[%s1388_s2 + $0x10] sm:$0xff] %v897_v62   ;;  %v628_v3 = vadd.f32 %v1039_v47, %v627_v63  ;;  %v707_v4 = vadd.f32 %v706_v61, %v672_v0 }
 0x104   :  { %985 = vst [vmem:[%s1388_s2 + $0x60] sm:$0xff] %v947_v1  }
 0x105   :  { %v708_v6 = vadd.f32 %v707_v4, %v673_v2  ;;  %v1043_v7 = vpop.f32.mrb[8].mxu0  ;;  %v629_v8 = vadd.f32 %v1040_v55, %v628_v3  ;;  %v1270_v9 = vpop.f32.mrb[8].mxu1 }
 0x106   :  { %v331_v10 = vpop.f32.mrb[9].mxu0  ;;  %v1272_v11 = vpop.f32.mrb[9].mxu1  ;;  %v677_v26 = vmul.f32 %v1043_v7, %v1043_v7 }
 0x107   :  { %v630_v12 = vadd.f32 %v629_v8, %v331_v10  ;;  %v675_v13 = vmul.f32 %v331_v10, %v331_v10  ;;  %v709_v14 = vadd.f32 %v708_v6, %v674_v5  ;;  %v1044_v15 = vpop.f32.mrb[10].mxu0  ;;  %v1274_v16 = vpop.f32.mrb[10].mxu1 }
 0x108   :  { %v912_v17 = vpack.c.bf16 %v1044_v15, %v1043_v7  ;;  %v334_v18 = vpop.f32.mrb[11].mxu0  ;;  %v962_v19 = vpack.c.bf16 %v1274_v16, %v1270_v9  ;;  %v1278_v20 = vpop.f32.mrb[11].mxu1  ;;  %v678_v31 = vmul.f32 %v1044_v15, %v1044_v15 }
 0x109   :  { %v710_v21 = vadd.f32 %v709_v14, %v675_v13  ;;  %v907_v22 = vpack.c.bf16 %v334_v18, %v331_v10  ;;  %v631_v23 = vadd.f32 %v630_v12, %v334_v18  ;;  %v676_v24 = vmul.f32 %v334_v18, %v334_v18 }
 0x10a   :  { %978 = vst [vmem:[%s1388_s2 + $0x28] sm:$0xff] %v912_v17   ;;  %988 = vst [vmem:[%s1388_s2 + $0x78] sm:$0xff] %v962_v19   ;;  %v957_v25 = vpack.c.bf16 %v1278_v20, %v1272_v11 }
 0x10b   :  { %977 = vst [vmem:[%s1388_s2 + $0x20] sm:$0xff] %v907_v22   ;;  %v632_v27 = vadd.f32 %v1043_v7, %v631_v23  ;;  %v711_v29 = vadd.f32 %v710_v21, %v676_v24  ;;  %v687_v22 = vmul.f32 %v1224_v30, %v1224_v30 }
 0x10c   :  { %987 = vst [vmem:[%s1388_s2 + $0x70] sm:$0xff] %v957_v25  }
 0x10d   :  { %v712_v33 = vadd.f32 %v711_v29, %v677_v26  ;;  %v1047_v34 = vpop.f32.mrb[12].mxu0  ;;  %v633_v35 = vadd.f32 %v1044_v15, %v632_v27  ;;  %v1294_v36 = vpop.f32.mrb[12].mxu1  ;;  %v688_v27 = vmul.f32 %v1230_v37, %v1230_v37  ;;  %v689_v29 = vmul.f32 %v1222_v28, %v1222_v28 }
 0x10e   :  { %v347_v38 = vpop.f32.mrb[13].mxu0  ;;  %v1296_v39 = vpop.f32.mrb[13].mxu1  ;;  %v681_v57 = vmul.f32 %v1047_v34, %v1047_v34 }
 0x10f   :  { %v634_v40 = vadd.f32 %v633_v35, %v347_v38  ;;  %v679_v41 = vmul.f32 %v347_v38, %v347_v38  ;;  %v713_v42 = vadd.f32 %v712_v33, %v678_v31  ;;  %v1048_v43 = vpop.f32.mrb[14].mxu0  ;;  %v1298_v44 = vpop.f32.mrb[14].mxu1 }
 0x110   :  { %v922_v45 = vpack.c.bf16 %v1048_v43, %v1047_v34  ;;  %v350_v46 = vpop.f32.mrb[15].mxu0  ;;  %v972_v47 = vpack.c.bf16 %v1298_v44, %v1294_v36  ;;  %v1302_v48 = vpop.f32.mrb[15].mxu1  ;;  %v682_v61 = vmul.f32 %v1048_v43, %v1048_v43 }
 0x111   :  { %v714_v50 = vadd.f32 %v713_v42, %v679_v41  ;;  %v917_v52 = vpack.c.bf16 %v350_v46, %v347_v38  ;;  %v635_v53 = vadd.f32 %v634_v40, %v350_v46  ;;  %v680_v54 = vmul.f32 %v350_v46, %v350_v46 }
 0x112   :  { %980 = vst [vmem:[%s1388_s2 + $0x38] sm:$0xff] %v922_v45   ;;  %990 = vst [vmem:[%s1388_s2 + $0x88] sm:$0xff] %v972_v47   ;;  %v967_v55 = vpack.c.bf16 %v1302_v48, %v1296_v39 }
 0x113   :  { %979 = vst [vmem:[%s1388_s2 + $0x30] sm:$0xff] %v917_v52   ;;  %v636_v58 = vadd.f32 %v1047_v34, %v635_v53  ;;  %v715_v59 = vadd.f32 %v714_v50, %v680_v54  ;;  %v690_v34 = vmul.f32 %v1226_v32, %v1226_v32 }
 0x114   :  { %989 = vst [vmem:[%s1388_s2 + $0x80] sm:$0xff] %v967_v55   ;;  %v696_v55 = vmul.f32 %v1278_v20, %v1278_v20 }
 0x115   :  { %v716_v62 = vadd.f32 %v715_v59, %v681_v57  ;;  %v1051_v63 = vpop.f32.mrb[16].mxu0  ;;  %v637_v0 = vadd.f32 %v1048_v43, %v636_v58  ;;  %v692_v43 = vmul.f32 %v1254_v60, %v1254_v60 }
 0x116   :  { %v363_v1 = vpop.f32.mrb[17].mxu0  ;;  %v685_v14 = vmul.f32 %v1051_v63, %v1051_v63 }
 0x117   :  { %v638_v2 = vadd.f32 %v637_v0, %v363_v1  ;;  %v683_v3 = vmul.f32 %v363_v1, %v363_v1  ;;  %v717_v4 = vadd.f32 %v716_v62, %v682_v61  ;;  %v1052_v5 = vpop.f32.mrb[18].mxu0 }
 0x118   :  { %v932_v6 = vpack.c.bf16 %v1052_v5, %v1051_v63  ;;  %v366_v7 = vpop.f32.mrb[19].mxu0  ;;  %v686_v18 = vmul.f32 %v1052_v5, %v1052_v5 }
 0x119   :  { %v718_v8 = vadd.f32 %v717_v4, %v683_v3  ;;  %v927_v10 = vpack.c.bf16 %v366_v7, %v363_v1  ;;  %v639_v12 = vadd.f32 %v638_v2, %v366_v7  ;;  %v684_v13 = vmul.f32 %v366_v7, %v366_v7 }
 0x11a   :  { %982 = vst [vmem:[%s1388_s2 + $0x48] sm:$0xff] %v932_v6   ;;  %v700_v1 = vmul.f32 %v1302_v48, %v1302_v48 }
 0x11b   :  { %981 = vst [vmem:[%s1388_s2 + $0x40] sm:$0xff] %v927_v10   ;;  %v640_v15 = vadd.f32 %v1051_v63, %v639_v12  ;;  %v719_v17 = vadd.f32 %v718_v8, %v684_v13 }
 0x11d   :  { %v720_v19 = vadd.f32 %v719_v17, %v685_v14  ;;  %v641_v21 = vadd.f32 %v1052_v5, %v640_v15 }
 0x11f   :  { %v642_v23 = vadd.f32 %v641_v21, %v1224_v30  ;;  %v721_v24 = vadd.f32 %v720_v19, %v686_v18  ;;  %v691_v30 = vmul.f32 %v1248_v51, %v1248_v51 }
 0x121   :  { %v722_v25 = vadd.f32 %v721_v24, %v687_v22  ;;  %v643_v26 = vadd.f32 %v642_v23, %v1230_v37 }
 0x123   :  { %v644_v31 = vadd.f32 %v1222_v28, %v643_v26  ;;  %v723_v33 = vadd.f32 %v722_v25, %v688_v27  ;;  %v693_v28 = vmul.f32 %v1246_v49, %v1246_v49 }
 0x125   :  { %v724_v35 = vadd.f32 %v723_v33, %v689_v29  ;;  %v645_v38 = vadd.f32 %v1226_v32, %v644_v31  ;;  %v694_v32 = vmul.f32 %v1250_v56, %v1250_v56 }
 0x127   :  { %v646_v40 = vadd.f32 %v645_v38, %v1248_v51  ;;  %v725_v41 = vadd.f32 %v724_v35, %v690_v34  ;;  %v695_v51 = vmul.f32 %v1272_v11, %v1272_v11 }
 0x129   :  { %v726_v42 = vadd.f32 %v725_v41, %v691_v30  ;;  %v647_v37 = vadd.f32 %v646_v40, %v1254_v60 }
 0x12b   :  { %v648_v45 = vadd.f32 %v1246_v49, %v647_v37  ;;  %v727_v46 = vadd.f32 %v726_v42, %v692_v43  ;;  %v697_v49 = vmul.f32 %v1270_v9, %v1270_v9 }
 0x12d   :  { %v728_v47 = vadd.f32 %v727_v46, %v693_v28  ;;  %v649_v50 = vadd.f32 %v1250_v56, %v648_v45  ;;  %v698_v56 = vmul.f32 %v1274_v16, %v1274_v16 }
 0x12f   :  { %v650_v52 = vadd.f32 %v649_v50, %v1272_v11  ;;  %v729_v53 = vadd.f32 %v728_v47, %v694_v32  ;;  %v699_v11 = vmul.f32 %v1296_v39, %v1296_v39 }
 0x131   :  { %v730_v54 = vadd.f32 %v729_v53, %v695_v51  ;;  %v651_v60 = vadd.f32 %v650_v52, %v1278_v20 }
 0x133   :  { %v652_v57 = vadd.f32 %v1270_v9, %v651_v60  ;;  %v731_v58 = vadd.f32 %v730_v54, %v696_v55  ;;  %v701_v9 = vmul.f32 %v1294_v36, %v1294_v36 }
 0x135   :  { %v732_v59 = vadd.f32 %v731_v58, %v697_v49  ;;  %v653_v61 = vadd.f32 %v1274_v16, %v652_v57  ;;  %v702_v16 = vmul.f32 %v1298_v44, %v1298_v44 }
 0x137   :  { %v654_v62 = vadd.f32 %v653_v61, %v1296_v39  ;;  %v733_v63 = vadd.f32 %v732_v59, %v698_v56 }
 0x139   :  { %v734_v0 = vadd.f32 %v733_v63, %v699_v11  ;;  %v655_v20 = vadd.f32 %v654_v62, %v1302_v48 }
 0x13b   :  { %v656_v2 = vadd.f32 %v1294_v36, %v655_v20  ;;  %v735_v3 = vadd.f32 %v734_v0, %v700_v1  ;;  %v622_v36 = vld [vmem:[%s1386_s3] sm:$0x1] }
 0x13d   :  { %v657_v4 = vadd.f32 %v1298_v44, %v656_v2  ;;  %v736_v5 = vadd.f32 %v735_v3, %v701_v9  ;;  %v666_v44 = vld [vmem:[%s1387_s4] sm:$0x1] }
 0x13f   :  { %v658_v39 = vrot.slane %v657_v4, 4  ;;  %v737_v6 = vadd.f32 %v736_v5, %v702_v16 }
 0x141   :  { %v659_v7 = vadd.f32 %v658_v39, %v657_v4  ;;  %v738_v8 = vrot.slane %v737_v6, 4 }
 0x143   :  { %v660_v10 = vrot.slane %v659_v7, 2  ;;  %v739_v12 = vadd.f32 %v738_v8, %v737_v6 }
 0x145   :  { %v661_v13 = vadd.f32 %v660_v10, %v659_v7  ;;  %v740_v48 = vrot.slane %v739_v12, 2 }
 0x147   :  { %v662_v14 = vrot.slane %v661_v13, 1  ;;  %v741_v15 = vadd.f32 %v740_v48, %v739_v12 }
 0x149   :  { %v663_v17 = vadd.f32 %v662_v14, %v661_v13  ;;  %v742_v18 = vrot.slane %v741_v15, 1 }
 0x14b   :  { %v664_v19 = vadd.f32 %v663_v17, %v622_v36  ;;  %v743_v21 = vadd.f32 %v742_v18, %v741_v15 }
 0x14d   :  { %665 = vst [vmem:[%s1386_s3] sm:$0x1] %v664_v19  ;;  %v744_v22 = vadd.f32 %v743_v21, %v666_v44 }
 0x14f   :  { %745 = vst [vmem:[%s1387_s4] sm:$0x1] %v744_v22 }

</bundles_post_ra>
